<compile_context>
chip_gen: v6e
topology: v6e:2x2x1
jax: 0.10.0
libtpu: 0.0.40
codegen_flags: <defaults>
</compile_context>

<pallas_src>
import functools

import jax
import jax.numpy as jnp
from jax.experimental import pallas as pl
from jax.experimental.pallas import tpu as pltpu

# logical (PyTorch) layer dims and lane-padded dims used inside the kernel
LAYER_DIMS  = [784, 520, 320, 240, 120, 10]
PADDED_DIMS = [896, 640, 384, 256, 128, 128]   # all multiples of 128


def _mlp_kernel(x_ref,
                w1_ref, b1_ref,
                w2_ref, b2_ref,
                w3_ref, b3_ref,
                w4_ref, b4_ref,
                w5_ref, b5_ref,
                o_ref):
    """Fused 5-layer MLP on one batch tile; bf16 MXU matmuls, f32 accumulation."""

    def layer(h, w_ref, b_ref, relu):
        y = jnp.dot(h, w_ref[...], preferred_element_type=jnp.float32)
        y = y + b_ref[...]
        if relu:
            return jnp.maximum(y, 0.0).astype(jnp.bfloat16)
        return y

    # f32 -> bf16 cast in-kernel: lands on the VPU (slack under the MXU) and
    # keeps the HBM input read at a single f32 pass (no wrapper cast op).
    h = x_ref[...].astype(jnp.bfloat16)      # (bt, 896)
    h = layer(h, w1_ref, b1_ref, True)       # (bt, 640)
    h = layer(h, w2_ref, b2_ref, True)       # (bt, 384)
    h = layer(h, w3_ref, b3_ref, True)       # (bt, 256)
    h = layer(h, w4_ref, b4_ref, True)       # (bt, 128)
    out = layer(h, w5_ref, b5_ref, False)    # (bt, 128) f32 logits (cols 10.. are 0)
    o_ref[...] = out.astype(o_ref.dtype)


def _round_up(n, m):
    return ((n + m - 1) // m) * m


def _pick_batch_tile(batch, cap=1024):
    """Batch rounded up to a multiple of 16 (bf16 sublane pack), capped so a
    single grid step handles up to `cap` rows (single-TC chips want one big
    step; per-step grid overhead ~0.35 us is pure loss for this kernel)."""
    return min(_round_up(batch, 16), cap)


@functools.partial(jax.jit, static_argnames=("batch_tile_cap", "v7x_core_parallel"))
def net_forward(x, prepared_params, *, batch_tile_cap=1024, v7x_core_parallel=False):
    """x: (B, 1, 28, 28) or (B, 784) float32. prepared_params from prepare_params().
    Returns (B, 10) float32 logits (matches PyTorch Net.forward)."""
    x2d = x.reshape(-1, LAYER_DIMS[0]).astype(jnp.float32)   # == x.view(-1, 784)
    B = x2d.shape[0]

    bt = _pick_batch_tile(B, cap=batch_tile_cap)
    if v7x_core_parallel:
        # v7x has 2 TensorCores: keep >= 2 grid steps so each core gets a tile.
        bt = max(16, min(bt, _round_up(pl.cdiv(B, 2), 16)))
    Bp = pl.cdiv(B, bt) * bt

    # Single fused pad: batch rows up to a tile multiple AND feature columns
    # 784 -> 896 (7*128) for lane-dense input tiles / dense MXU K.
    x2d = jnp.pad(x2d, ((0, Bp - B), (0, PADDED_DIMS[0] - LAYER_DIMS[0])))

    (w1, b1), (w2, b2), (w3, b3), (w4, b4), (w5, b5) = prepared_params

    def resident_spec(shape):
        # whole-array block, same block index every grid step -> stays in VMEM
        return pl.BlockSpec(shape, lambda i: (0, 0))

    in_specs = [pl.BlockSpec((bt, PADDED_DIMS[0]), lambda i: (i, 0))]
    for w, b in prepared_params:
        in_specs.append(resident_spec(w.shape))
        in_specs.append(resident_spec(b.shape))

    n_out = PADDED_DIMS[-1]
    out_spec = pl.BlockSpec((bt, n_out), lambda i: (i, 0))

    # advisory cost estimate for XLA scheduling around the kernel
    flops = 2 * Bp * sum(a * b for a, b in zip(PADDED_DIMS[:-1], PADDED_DIMS[1:]))
    weight_bytes = sum(int(w.size) * w.dtype.itemsize + int(b.size) * b.dtype.itemsize
                       for w, b in prepared_params)
    bytes_accessed = Bp * PADDED_DIMS[0] * 4 + weight_bytes + Bp * n_out * 4
    cost = pl.CostEstimate(flops=flops, transcendentals=0,
                           bytes_accessed=bytes_accessed)

    dim_sem = (pltpu.CORE_PARALLEL,) if v7x_core_parallel else ("parallel",)

    out = pl.pallas_call(
        _mlp_kernel,
        out_shape=jax.ShapeDtypeStruct((Bp, n_out), jnp.float32),
        grid_spec=pltpu.PrefetchScalarGridSpec(
            num_scalar_prefetch=0,
            grid=(Bp // bt,),
            in_specs=in_specs,
            out_specs=out_spec,
        ),
        compiler_params=pltpu.CompilerParams(
            dimension_semantics=dim_sem,
            vmem_limit_bytes=32 << 20,        # fits v7x's 64 MiB physical VMEM
        ),
        cost_estimate=cost,
    )(x2d, w1, b1, w2, b2, w3, b3, w4, b4, w5, b5)

    # Drop batch + lane padding to match PyTorch semantics exactly.
    # (A consumer that accepts the padded (Bp,128) buffer can skip this slice.)
    return out[:B, :LAYER_DIMS[-1]]


def init_params(key):
    """PyTorch-default-style init: U(-1/sqrt(fan_in), +1/sqrt(fan_in)).
    Weights stored transposed as (in_features, out_features); biases (1, out)."""
    params = []
    for fan_in, fan_out in zip(LAYER_DIMS[:-1], LAYER_DIMS[1:]):
        key, kw, kb = jax.random.split(key, 3)
        bound = 1.0 / float(fan_in) ** 0.5
        w = jax.random.uniform(kw, (fan_in, fan_out), jnp.float32, -bound, bound)
        b = jax.random.uniform(kb, (1, fan_out), jnp.float32, -bound, bound)
        params.append((w, b))
    return params


def prepare_params(params):
    """Pad feature dims to multiples of 128 (input 784->896) and cast weights to
    bf16 for the MXU. Padded entries are exactly zero -> numerically inert."""
    prepped = []
    for (w, b), pin, pout in zip(params, PADDED_DIMS[:-1], PADDED_DIMS[1:]):
        fin, fout = w.shape
        wp = jnp.zeros((pin, pout), jnp.bfloat16).at[:fin, :fout].set(
            w.astype(jnp.bfloat16))
        bp = jnp.zeros((1, pout), jnp.float32).at[:, :fout].set(b)
        prepped.append((wp, bp))
    return prepped


def reference_forward(x, params):
    """Pure-JAX f32 reference for a correctness check."""
    h = x.reshape(-1, LAYER_DIMS[0]).astype(jnp.float32)
    for i, (w, b) in enumerate(params):
        h = h @ w + b
        if i < len(params) - 1:
            h = jnp.maximum(h, 0.0)
    return h


if __name__ == "__main__":
    key = jax.random.PRNGKey(0)
    key, kx = jax.random.split(key)

    params = init_params(key)
    kernel_params = prepare_params(params)

    # Small MNIST-like NCHW batch; batch is rounded up to 16 rows inside.
    x = jax.random.normal(kx, (8, 1, 28, 28), dtype=jnp.float32)

    out = jax.block_until_ready(net_forward(x, kernel_params))
    ref = reference_forward(x, params)

    assert out.shape == (8, 10)
    # bf16 matmul inputs (f32 accumulation) -> relaxed tolerance vs f32 reference
    max_err = float(jnp.max(jnp.abs(out - ref)))
    assert jnp.allclose(out, ref, atol=5e-2, rtol=5e-2), (
        f"mismatch vs reference, max abs err {max_err:.4f}")
    print("KERNEL_OK")
</pallas_src>

<mosaic_0001>
module attributes {stable_mosaic.version = 11 : i64} {
  func.func @_mlp_kernel(%arg0: i32, %arg1: memref<16x896xf32, #tpu.memory_space<vmem>>, %arg2: memref<896x640xbf16, #tpu.memory_space<vmem>>, %arg3: memref<1x640xf32, #tpu.memory_space<vmem>>, %arg4: memref<640x384xbf16, #tpu.memory_space<vmem>>, %arg5: memref<1x384xf32, #tpu.memory_space<vmem>>, %arg6: memref<384x256xbf16, #tpu.memory_space<vmem>>, %arg7: memref<1x256xf32, #tpu.memory_space<vmem>>, %arg8: memref<256x128xbf16, #tpu.memory_space<vmem>>, %arg9: memref<1x128xf32, #tpu.memory_space<vmem>>, %arg10: memref<128x128xbf16, #tpu.memory_space<vmem>>, %arg11: memref<1x128xf32, #tpu.memory_space<vmem>>, %arg12: memref<16x128xf32, #tpu.memory_space<vmem>>) attributes {dimension_semantics = [#tpu.dimension_semantics<parallel>], iteration_bounds = array<i64: 1>, scalar_prefetch = 0 : i64, scratch_operands = 0 : i64, tpu.core_type = #tpu.core_type<tc>, window_params = [{transform_indices = @transform_0, window_bounds = array<i64: 16, 896>}, {pipeline_mode = #tpu.pipeline_mode<synchronous>, transform_indices = @transform_1, window_bounds = array<i64: 896, 640>}, {pipeline_mode = #tpu.pipeline_mode<synchronous>, transform_indices = @transform_2, window_bounds = array<i64: 1, 640>}, {pipeline_mode = #tpu.pipeline_mode<synchronous>, transform_indices = @transform_3, window_bounds = array<i64: 640, 384>}, {pipeline_mode = #tpu.pipeline_mode<synchronous>, transform_indices = @transform_4, window_bounds = array<i64: 1, 384>}, {pipeline_mode = #tpu.pipeline_mode<synchronous>, transform_indices = @transform_5, window_bounds = array<i64: 384, 256>}, {pipeline_mode = #tpu.pipeline_mode<synchronous>, transform_indices = @transform_6, window_bounds = array<i64: 1, 256>}, {pipeline_mode = #tpu.pipeline_mode<synchronous>, transform_indices = @transform_7, window_bounds = array<i64: 256, 128>}, {pipeline_mode = #tpu.pipeline_mode<synchronous>, transform_indices = @transform_8, window_bounds = array<i64: 1, 128>}, {pipeline_mode = #tpu.pipeline_mode<synchronous>, transform_indices = @transform_9, window_bounds = array<i64: 128, 128>}, {pipeline_mode = #tpu.pipeline_mode<synchronous>, transform_indices = @transform_10, window_bounds = array<i64: 1, 128>}, {transform_indices = @transform_11, window_bounds = array<i64: 16, 128>}]} {
    %c0 = arith.constant 0 : index
    %c0_0 = arith.constant 0 : index
    %0 = vector.load %arg1[%c0, %c0_0] : memref<16x896xf32, #tpu.memory_space<vmem>>, vector<16x896xf32>
    %1 = arith.truncf %0 : vector<16x896xf32> to vector<16x896xbf16>
    %c0_1 = arith.constant 0 : index
    %c0_2 = arith.constant 0 : index
    %2 = vector.load %arg2[%c0_1, %c0_2] : memref<896x640xbf16, #tpu.memory_space<vmem>>, vector<896x640xbf16>
    %cst = arith.constant dense<0.000000e+00> : vector<16x640xf32>
    %3 = tpu.matmul %1, %2, %cst {dimension_numbers = #tpu.dot_dimension_numbers<[1], [0], [0], [1], [0, 0, 1, 1], [], []>} : vector<16x896xbf16>, vector<896x640xbf16>, vector<16x640xf32> -> vector<16x640xf32>
    %c0_3 = arith.constant 0 : index
    %c0_4 = arith.constant 0 : index
    %4 = vector.load %arg3[%c0_3, %c0_4] : memref<1x640xf32, #tpu.memory_space<vmem>>, vector<1x640xf32>
    %5 = vector.broadcast %4 : vector<1x640xf32> to vector<16x640xf32>
    %6 = arith.addf %3, %5 : vector<16x640xf32>
    %cst_5 = arith.constant 0.000000e+00 : f32
    %7 = vector.broadcast %cst_5 : f32 to vector<16x640xf32>
    %8 = arith.maximumf %6, %7 : vector<16x640xf32>
    %9 = arith.truncf %8 : vector<16x640xf32> to vector<16x640xbf16>
    %c0_6 = arith.constant 0 : index
    %c0_7 = arith.constant 0 : index
    %10 = vector.load %arg4[%c0_6, %c0_7] : memref<640x384xbf16, #tpu.memory_space<vmem>>, vector<640x384xbf16>
    %cst_8 = arith.constant dense<0.000000e+00> : vector<16x384xf32>
    %11 = tpu.matmul %9, %10, %cst_8 {dimension_numbers = #tpu.dot_dimension_numbers<[1], [0], [0], [1], [0, 0, 1, 1], [], []>} : vector<16x640xbf16>, vector<640x384xbf16>, vector<16x384xf32> -> vector<16x384xf32>
    %c0_9 = arith.constant 0 : index
    %c0_10 = arith.constant 0 : index
    %12 = vector.load %arg5[%c0_9, %c0_10] : memref<1x384xf32, #tpu.memory_space<vmem>>, vector<1x384xf32>
    %13 = vector.broadcast %12 : vector<1x384xf32> to vector<16x384xf32>
    %14 = arith.addf %11, %13 : vector<16x384xf32>
    %cst_11 = arith.constant 0.000000e+00 : f32
    %15 = vector.broadcast %cst_11 : f32 to vector<16x384xf32>
    %16 = arith.maximumf %14, %15 : vector<16x384xf32>
    %17 = arith.truncf %16 : vector<16x384xf32> to vector<16x384xbf16>
    %c0_12 = arith.constant 0 : index
    %c0_13 = arith.constant 0 : index
    %18 = vector.load %arg6[%c0_12, %c0_13] : memref<384x256xbf16, #tpu.memory_space<vmem>>, vector<384x256xbf16>
    %cst_14 = arith.constant dense<0.000000e+00> : vector<16x256xf32>
    %19 = tpu.matmul %17, %18, %cst_14 {dimension_numbers = #tpu.dot_dimension_numbers<[1], [0], [0], [1], [0, 0, 1, 1], [], []>} : vector<16x384xbf16>, vector<384x256xbf16>, vector<16x256xf32> -> vector<16x256xf32>
    %c0_15 = arith.constant 0 : index
    %c0_16 = arith.constant 0 : index
    %20 = vector.load %arg7[%c0_15, %c0_16] : memref<1x256xf32, #tpu.memory_space<vmem>>, vector<1x256xf32>
    %21 = vector.broadcast %20 : vector<1x256xf32> to vector<16x256xf32>
    %22 = arith.addf %19, %21 : vector<16x256xf32>
    %cst_17 = arith.constant 0.000000e+00 : f32
    %23 = vector.broadcast %cst_17 : f32 to vector<16x256xf32>
    %24 = arith.maximumf %22, %23 : vector<16x256xf32>
    %25 = arith.truncf %24 : vector<16x256xf32> to vector<16x256xbf16>
    %c0_18 = arith.constant 0 : index
    %c0_19 = arith.constant 0 : index
    %26 = vector.load %arg8[%c0_18, %c0_19] : memref<256x128xbf16, #tpu.memory_space<vmem>>, vector<256x128xbf16>
    %cst_20 = arith.constant dense<0.000000e+00> : vector<16x128xf32>
    %27 = tpu.matmul %25, %26, %cst_20 {dimension_numbers = #tpu.dot_dimension_numbers<[1], [0], [0], [1], [0, 0, 1, 1], [], []>} : vector<16x256xbf16>, vector<256x128xbf16>, vector<16x128xf32> -> vector<16x128xf32>
    %c0_21 = arith.constant 0 : index
    %c0_22 = arith.constant 0 : index
    %28 = vector.load %arg9[%c0_21, %c0_22] : memref<1x128xf32, #tpu.memory_space<vmem>>, vector<1x128xf32>
    %29 = vector.broadcast %28 : vector<1x128xf32> to vector<16x128xf32>
    %30 = arith.addf %27, %29 : vector<16x128xf32>
    %cst_23 = arith.constant 0.000000e+00 : f32
    %31 = vector.broadcast %cst_23 : f32 to vector<16x128xf32>
    %32 = arith.maximumf %30, %31 : vector<16x128xf32>
    %33 = arith.truncf %32 : vector<16x128xf32> to vector<16x128xbf16>
    %c0_24 = arith.constant 0 : index
    %c0_25 = arith.constant 0 : index
    %34 = vector.load %arg10[%c0_24, %c0_25] : memref<128x128xbf16, #tpu.memory_space<vmem>>, vector<128x128xbf16>
    %cst_26 = arith.constant dense<0.000000e+00> : vector<16x128xf32>
    %35 = tpu.matmul %33, %34, %cst_26 {dimension_numbers = #tpu.dot_dimension_numbers<[1], [0], [0], [1], [0, 0, 1, 1], [], []>} : vector<16x128xbf16>, vector<128x128xbf16>, vector<16x128xf32> -> vector<16x128xf32>
    %c0_27 = arith.constant 0 : index
    %c0_28 = arith.constant 0 : index
    %36 = vector.load %arg11[%c0_27, %c0_28] : memref<1x128xf32, #tpu.memory_space<vmem>>, vector<1x128xf32>
    %37 = vector.broadcast %36 : vector<1x128xf32> to vector<16x128xf32>
    %38 = arith.addf %35, %37 : vector<16x128xf32>
    %c0_29 = arith.constant 0 : index
    %c0_30 = arith.constant 0 : index
    %39 = vector.load %arg12[%c0_29, %c0_30] : memref<16x128xf32, #tpu.memory_space<vmem>>, vector<16x128xf32>
    tpu.vector_store %arg12[%c0_29, %c0_30], %38 {strides = array<i32>} : memref<16x128xf32, #tpu.memory_space<vmem>>, vector<16x128xf32>,
    return
  }
  func.func @transform_0(%arg0: i32) -> (i32, i32) {
    %c0_i32 = arith.constant 0 : i32
    %c0_i32_0 = arith.constant 0 : i32
    return %arg0, %c0_i32 : i32, i32
  }
  func.func @transform_1(%arg0: i32) -> (i32, i32) {
    %c0_i32 = arith.constant 0 : i32
    %c0_i32_0 = arith.constant 0 : i32
    %c0_i32_1 = arith.constant 0 : i32
    return %c0_i32, %c0_i32_0 : i32, i32
  }
  func.func @transform_2(%arg0: i32) -> (i32, i32) {
    %c0_i32 = arith.constant 0 : i32
    %c0_i32_0 = arith.constant 0 : i32
    %c0_i32_1 = arith.constant 0 : i32
    return %c0_i32, %c0_i32_0 : i32, i32
  }
  func.func @transform_3(%arg0: i32) -> (i32, i32) {
    %c0_i32 = arith.constant 0 : i32
    %c0_i32_0 = arith.constant 0 : i32
    %c0_i32_1 = arith.constant 0 : i32
    return %c0_i32, %c0_i32_0 : i32, i32
  }
  func.func @transform_4(%arg0: i32) -> (i32, i32) {
    %c0_i32 = arith.constant 0 : i32
    %c0_i32_0 = arith.constant 0 : i32
    %c0_i32_1 = arith.constant 0 : i32
    return %c0_i32, %c0_i32_0 : i32, i32
  }
  func.func @transform_5(%arg0: i32) -> (i32, i32) {
    %c0_i32 = arith.constant 0 : i32
    %c0_i32_0 = arith.constant 0 : i32
    %c0_i32_1 = arith.constant 0 : i32
    return %c0_i32, %c0_i32_0 : i32, i32
  }
  func.func @transform_6(%arg0: i32) -> (i32, i32) {
    %c0_i32 = arith.constant 0 : i32
    %c0_i32_0 = arith.constant 0 : i32
    %c0_i32_1 = arith.constant 0 : i32
    return %c0_i32, %c0_i32_0 : i32, i32
  }
  func.func @transform_7(%arg0: i32) -> (i32, i32) {
    %c0_i32 = arith.constant 0 : i32
    %c0_i32_0 = arith.constant 0 : i32
    %c0_i32_1 = arith.constant 0 : i32
    return %c0_i32, %c0_i32_0 : i32, i32
  }
  func.func @transform_8(%arg0: i32) -> (i32, i32) {
    %c0_i32 = arith.constant 0 : i32
    %c0_i32_0 = arith.constant 0 : i32
    %c0_i32_1 = arith.constant 0 : i32
    return %c0_i32, %c0_i32_0 : i32, i32
  }
  func.func @transform_9(%arg0: i32) -> (i32, i32) {
    %c0_i32 = arith.constant 0 : i32
    %c0_i32_0 = arith.constant 0 : i32
    %c0_i32_1 = arith.constant 0 : i32
    return %c0_i32, %c0_i32_0 : i32, i32
  }
  func.func @transform_10(%arg0: i32) -> (i32, i32) {
    %c0_i32 = arith.constant 0 : i32
    %c0_i32_0 = arith.constant 0 : i32
    %c0_i32_1 = arith.constant 0 : i32
    return %c0_i32, %c0_i32_0 : i32, i32
  }
  func.func @transform_11(%arg0: i32) -> (i32, i32) {
    %c0_i32 = arith.constant 0 : i32
    %c0_i32_0 = arith.constant 0 : i32
    return %arg0, %c0_i32 : i32, i32
  }
}

</mosaic_0001>

<bundles_post_ra>
// kernel: net_forward.1
= control target key start
LH: loop header
LB: loop body
LE: loop exit
PB: predicated region body
PF: predicated region fallthrough
CT: control target
= control target key end

     0   :  { %16 = vsyncpa [#allocation3], 0  ;;  %s6162_s0 = inlined_call_operand.vmem [shape: f32[16,896], index: 0, kind: input, shape index: {}]   ;;  %s6163_s1 = inlined_call_operand.hbm [shape: bf16[896,640], index: 1, kind: input, shape index: {}]   ;;  %s6164_s2 = inlined_call_operand.hbm [shape: f32[1,640], index: 2, kind: input, shape index: {}]   ;;  %s6165_s3 = inlined_call_operand.hbm [shape: bf16[640,384], index: 3, kind: input, shape index: {}]   ;;  %s6166_s4 = inlined_call_operand.hbm [shape: f32[1,384], index: 4, kind: input, shape index: {}]   ;;  %s6167_s5 = inlined_call_operand.hbm [shape: bf16[384,256], index: 5, kind: input, shape index: {}]   ;;  %s6168_s6 = inlined_call_operand.hbm [shape: f32[1,256], index: 6, kind: input, shape index: {}]   ;;  %s6169_s7 = inlined_call_operand.hbm [shape: bf16[256,128], index: 7, kind: input, shape index: {}]   ;;  %s6170_s8 = inlined_call_operand.hbm [shape: f32[1,128], index: 8, kind: input, shape index: {}]   ;;  %s6171_s9 = inlined_call_operand.hbm [shape: bf16[128,128], index: 9, kind: input, shape index: {}]   ;;  %s6172_s10 = inlined_call_operand.hbm [shape: f32[1,128], index: 10, kind: input, shape index: {}]   ;;  %s6173_s11 = inlined_call_operand.vmem [shape: f32[16,128], index: 11, kind: output, shape index: {}]  }
   0x1   :  { %17 = vsyncpa [#allocation5], 0 }
   0x2   :  { %18 = vsyncpa [#allocation8], 0 }
   0x3   :  { %19 = vsyncpa [#allocation11], 0 }
   0x4   :  { %20 = vsyncpa [#allocation14], 0 }
   0x5   :  { %21 = vsyncpa [#allocation17], 0  ;;  %s5875_s17 = smov [#allocation4]   ;;  %s5876_s19 = smov [#allocation7]  }
   0x6   :  { %s42_s18 = sshll.u32 %s5875_s17, 4  ;;  %s64_s20 = sshll.u32 %s5876_s19, 4  ;;  %s43_s18 = int_to_ptr.vmem [resolvable:$true] %s42_s18  ;;  %s65_s20 = int_to_ptr.vmem [resolvable:$true] %s64_s20 }
   0x7   :  { %s5671_s21 = scalar_lea.vmem %s43_s18, 80  ;;  %s5675_s22 = scalar_lea.vmem %s43_s18, 96 }
   0x8   :  { %p5672_p0 = scmp.ne.s32.totalorder %s43_s18, %s5671_s21  ;;  %p5676_p1 = scmp.lt.s32.totalorder %s43_s18, %s43_s18 }
   0x9   :  { %p5677_p2 = scmp.lt.s32.totalorder %s5675_s22, %s5671_s21 }
   0xb   :  { %p5678_p3 = por %p5677_p2, %p5676_p1 }
   0xd   :  { %p5679_p4 = pnand %p5678_p3, %p5672_p0 }
   0xf   :  { %5682 = shalt.err (!%p5679_p4)
}
  0x10   :  { %45 = dma.hbm_to_vmem [thread:$0]  %s6164_s2, 80, %s43_s18, [#allocation5]  }
  0x11   :  { %s5691_s25 = scalar_lea.vmem %s65_s20, 48  ;;  %s5695_s26 = scalar_lea.vmem %s65_s20, 64 }
  0x12   :  { %p5692_p5 = scmp.ne.s32.totalorder %s65_s20, %s5691_s25  ;;  %p5696_p6 = scmp.lt.s32.totalorder %s65_s20, %s65_s20 }
  0x13   :  { %p5697_p7 = scmp.lt.s32.totalorder %s5695_s26, %s5691_s25 }
  0x15   :  { %p5698_p8 = por %p5697_p7, %p5696_p6 }
  0x17   :  { %p5699_p9 = pnand %p5698_p8, %p5692_p5 }
  0x19   :  { %5702 = shalt.err (!%p5699_p9)
}
  0x1a   :  { %67 = dma.hbm_to_vmem [thread:$0]  %s6166_s4, 48, %s65_s20, [#allocation8]  }
  0x1b   :  { %s5877_s29 = smov [#allocation10]   ;;  %s5878_s12 = smov [#allocation13]  }
  0x1c   :  { %s86_s30 = sshll.u32 %s5877_s29, 4  ;;  %s108_s13 = sshll.u32 %s5878_s12, 4  ;;  %s87_s30 = int_to_ptr.vmem [resolvable:$true] %s86_s30  ;;  %s109_s13 = int_to_ptr.vmem [resolvable:$true] %s108_s13 }
  0x1d   :  { %s5711_s14 = scalar_lea.vmem %s87_s30, 32  ;;  %p5716_p11 = scmp.lt.s32.totalorder %s87_s30, %s87_s30 }
  0x1e   :  { %p5712_p10 = scmp.ne.s32.totalorder %s87_s30, %s5711_s14  ;;  %p5717_p12 = scmp.lt.s32.totalorder %s5711_s14, %s5711_s14 }
  0x20   :  { %p5718_p13 = por %p5717_p12, %p5716_p11 }
  0x22   :  { %p5719_p0 = pnand %p5718_p13, %p5712_p10 }
  0x24   :  { %5722 = shalt.err (!%p5719_p0)
}
  0x25   :  { %89 = dma.hbm_to_vmem [thread:$0]  %s6168_s6, 32, %s87_s30, [#allocation11]  }
  0x26   :  { %s5731_s16 = scalar_lea.vmem %s109_s13, 16  ;;  %s5735_s4 = scalar_lea.vmem %s109_s13, 32 }
  0x27   :  { %p5732_p1 = scmp.ne.s32.totalorder %s109_s13, %s5731_s16  ;;  %p5736_p2 = scmp.lt.s32.totalorder %s109_s13, %s109_s13 }
  0x28   :  { %p5737_p3 = scmp.lt.s32.totalorder %s5735_s4, %s5731_s16 }
  0x2a   :  { %p5738_p4 = por %p5737_p3, %p5736_p2 }
  0x2c   :  { %p5739_p5 = pnand %p5738_p4, %p5732_p1 }
  0x2e   :  { %5742 = shalt.err (!%p5739_p5)
}
  0x2f   :  { %111 = dma.hbm_to_vmem [thread:$0]  %s6170_s8, 16, %s109_s13, [#allocation14]  }
  0x30   :  { %s5879_s19 = smov [#allocation2]  }
  0x31   :  { %s29_s20 = sshll.u32 %s5879_s19, 4  ;;  %s30_s20 = int_to_ptr.vmem [resolvable:$true] %s29_s20 }
  0x32   :  { %s5751_s21 = scalar_lea.vmem %s30_s20, 35840  ;;  %p5756_p7 = scmp.lt.s32.totalorder %s30_s20, %s30_s20 }
  0x33   :  { %p5752_p6 = scmp.ne.s32.totalorder %s30_s20, %s5751_s21  ;;  %p5757_p8 = scmp.lt.s32.totalorder %s5751_s21, %s5751_s21 }
  0x35   :  { %p5758_p9 = por %p5757_p8, %p5756_p7 }
  0x37   :  { %p5759_p10 = pnand %p5758_p9, %p5752_p6 }
  0x39   :  { %5762 = shalt.err (!%p5759_p10)
}
  0x3a   :  { %s5880_s6 = smov 320   ;;  %s5881_s22 = smov 20  }
  0x3b   :  { %35 = dma.hbm_to_vmem [thread:$0]  %s6163_s1, 35840, %s30_s20, [#allocation3], %s5880_s6, %s5880_s6, %s5881_s22  }
  0x3c   :  { %s5882_s25 = smov [#allocation6]  }
  0x3d   :  { %s51_s26 = sshll.u32 %s5882_s25, 4  ;;  %s52_s26 = int_to_ptr.vmem [resolvable:$true] %s51_s26 }
  0x3e   :  { %s5771_s8 = scalar_lea.vmem %s52_s26, 15360  ;;  %p5776_p12 = scmp.lt.s32.totalorder %s52_s26, %s52_s26 }
  0x3f   :  { %p5772_p11 = scmp.ne.s32.totalorder %s52_s26, %s5771_s8  ;;  %p5777_p13 = scmp.lt.s32.totalorder %s5771_s8, %s5771_s8 }
  0x41   :  { %p5778_p0 = por %p5777_p13, %p5776_p12 }
  0x43   :  { %p5779_p1 = pnand %p5778_p0, %p5772_p11 }
  0x45   :  { %5782 = shalt.err (!%p5779_p1)
}
  0x46   :  { %s5883_s27 = smov 192   ;;  %s5884_s28 = smov 12  }
  0x47   :  { %57 = dma.hbm_to_vmem [thread:$0]  %s6165_s3, 15360, %s52_s26, [#allocation5], %s5883_s27, %s5883_s27, %s5884_s28  }
  0x48   :  { %s5885_s12 = smov [#allocation9]  }
  0x49   :  { %s73_s13 = sshll.u32 %s5885_s12, 4  ;;  %s74_s13 = int_to_ptr.vmem [resolvable:$true] %s73_s13 }
  0x4a   :  { %s5791_s1 = scalar_lea.vmem %s74_s13, 6144  ;;  %p5796_p3 = scmp.lt.s32.totalorder %s74_s13, %s74_s13 }
  0x4b   :  { %p5792_p2 = scmp.ne.s32.totalorder %s74_s13, %s5791_s1  ;;  %p5797_p4 = scmp.lt.s32.totalorder %s5791_s1, %s5791_s1 }
  0x4d   :  { %p5798_p5 = por %p5797_p4, %p5796_p3 }
  0x4f   :  { %p5799_p6 = pnand %p5798_p5, %p5792_p2 }
  0x51   :  { %5802 = shalt.err (!%p5799_p6)
}
  0x52   :  { %s5886_s14 = smov 128   ;;  %s5887_s2 = smov 8  }
  0x53   :  { %79 = dma.hbm_to_vmem [thread:$0]  %s6167_s5, 6144, %s74_s13, [#allocation8], %s5886_s14, %s5886_s14, %s5887_s2  }
  0x54   :  { %s5888_s4 = smov [#allocation12]  }
  0x55   :  { %s95_s17 = sshll.u32 %s5888_s4, 4  ;;  %s96_s17 = int_to_ptr.vmem [resolvable:$true] %s95_s17 }
  0x56   :  { %s5811_s3 = scalar_lea.vmem %s96_s17, 2048  ;;  %p5816_p8 = scmp.lt.s32.totalorder %s96_s17, %s96_s17 }
  0x57   :  { %p5812_p7 = scmp.ne.s32.totalorder %s96_s17, %s5811_s3  ;;  %p5817_p9 = scmp.lt.s32.totalorder %s5811_s3, %s5811_s3 }
  0x59   :  { %p5818_p10 = por %p5817_p9, %p5816_p8 }
  0x5b   :  { %p5819_p11 = pnand %p5818_p10, %p5812_p7 }
  0x5d   :  { %5822 = shalt.err (!%p5819_p11)
}
  0x5e   :  { %s5889_s18 = smov 64   ;;  %s5890_s19 = smov 4  }
  0x5f   :  { %101 = dma.hbm_to_vmem [thread:$0]  %s6169_s7, 2048, %s96_s17, [#allocation11], %s5889_s18, %s5889_s18, %s5890_s19  }
  0x60   :  { %s5891_s6 = smov [#allocation15]   ;;  %s5892_s23 = smov [#allocation16]  }
  0x61   :  { %s117_s22 = sshll.u32 %s5891_s6, 4  ;;  %s130_s5 = sshll.u32 %s5892_s23, 4  ;;  %s118_s22 = int_to_ptr.vmem [resolvable:$true] %s117_s22  ;;  %s131_s5 = int_to_ptr.vmem [resolvable:$true] %s130_s5 }
  0x62   :  { %s5831_s24 = scalar_lea.vmem %s118_s22, 1024  ;;  %p5836_p13 = scmp.lt.s32.totalorder %s118_s22, %s118_s22 }
  0x63   :  { %p5832_p12 = scmp.ne.s32.totalorder %s118_s22, %s5831_s24  ;;  %p5837_p0 = scmp.lt.s32.totalorder %s5831_s24, %s5831_s24 }
  0x65   :  { %p5838_p1 = por %p5837_p0, %p5836_p13 }
  0x67   :  { %p5839_p2 = pnand %p5838_p1, %p5832_p12 }
  0x69   :  { %5842 = shalt.err (!%p5839_p2)
}
  0x6a   :  { %123 = dma.hbm_to_vmem [thread:$0]  %s6171_s9, 1024, %s118_s22, [#allocation14], %s5889_s18, %s5889_s18, %s5890_s19  }
  0x6b   :  { %s5851_s8 = scalar_lea.vmem %s131_s5, 16  ;;  %s5855_s7 = scalar_lea.vmem %s131_s5, 32 }
  0x6c   :  { %p5852_p3 = scmp.ne.s32.totalorder %s131_s5, %s5851_s8  ;;  %p5856_p4 = scmp.lt.s32.totalorder %s131_s5, %s131_s5 }
  0x6d   :  { %p5857_p5 = scmp.lt.s32.totalorder %s5855_s7, %s5851_s8 }
  0x6f   :  { %p5858_p6 = por %p5857_p5, %p5856_p4 }
  0x71   :  { %p5859_p7 = pnand %p5858_p6, %p5852_p3 }
  0x73   :  { %5862 = shalt.err (!%p5859_p7)
}
  0x74   :  { %133 = dma.hbm_to_vmem [thread:$0]  %s6172_s10, 16, %s131_s5, [#allocation17]  }
  0x75   :  { %5863 = dma.done.wait [#allocation3], 35840  }
  0x76   :  { %5864 = vsyncadd [#allocation3], 4294931456 }
  0x77   :  { %5865 = dma.done.wait [#allocation5], 15440  }
  0x78   :  { %5866 = vsyncadd [#allocation5], 4294951856 }
  0x79   :  { %5867 = dma.done.wait [#allocation8], 6192  }
  0x7a   :  { %5868 = vsyncadd [#allocation8], 4294961104 }
  0x7b   :  { %5869 = dma.done.wait [#allocation11], 2080  }
  0x7c   :  { %5870 = vsyncadd [#allocation11], 4294965216 }
  0x7d   :  { %5871 = dma.done.wait [#allocation14], 1040  }
  0x7e   :  { %5872 = vsyncadd [#allocation14], 4294966256 }
  0x7f   :  { %5873 = dma.done.wait [#allocation17], 16  }
  0x80   :  { %5874 = vsyncadd [#allocation17], 4294967280  ;;  %v5015_v0 = vld [vmem:[#allocation2 + $0x11c] ss:$20 sps:$4 sm:$0xff]   ;;  %v5019_v2 = vld [vmem:[#allocation2 + $0x118] ss:$20 sps:$4 sm:$0xff]  }
  0x81   :  { %v5017_v1 = vld [vmem:[#allocation2 + $0x39c] ss:$20 sps:$4 sm:$0xff]   ;;  %2005 = vmatprep.subr.bf16.mxu0 %v5015_v0  ;;  %v5020_v3 = vld [vmem:[#allocation2 + $0x398] ss:$20 sps:$4 sm:$0xff]   ;;  %v5021_v4 = vld [vmem:[#allocation2 + $0xf4] ss:$20 sps:$4 sm:$0xff]  }
  0x82   :  { %2048 = vmatprep.subr.bf16.mxu1 %v5017_v1  ;;  %2006 = vmatpush1.bf16.msra.mxu0 %v5019_v2  ;;  %v5023_v5 = vld [vmem:[#allocation2 + $0x374] ss:$20 sps:$4 sm:$0xff]   ;;  %v5025_v6 = vld [vmem:[#allocation2 + $0xf0] ss:$20 sps:$4 sm:$0xff]   ;;  %v5027_v8 = vld [vmem:[#allocation2 + $0xcc] ss:$20 sps:$4 sm:$0xff]  }
  0x83   :  { %2049 = vmatpush1.bf16.msra.mxu1 %v5020_v3  ;;  %2007 = vmatprep.subr.bf16.mxu0 %v5021_v4  ;;  %v5026_v7 = vld [vmem:[#allocation2 + $0x370] ss:$20 sps:$4 sm:$0xff]   ;;  %v5029_v9 = vld [vmem:[#allocation2 + $0x34c] ss:$20 sps:$4 sm:$0xff]   ;;  %v5031_v10 = vld [vmem:[#allocation2 + $0xc8] ss:$20 sps:$4 sm:$0xff]  }
  0x84   :  { %2050 = vmatprep.subr.bf16.mxu1 %v5023_v5  ;;  %v5032_v11 = vld [vmem:[#allocation2 + $0x348] ss:$20 sps:$4 sm:$0xff]   ;;  %v5033_v12 = vld [vmem:[#allocation2 + $0xa4] ss:$20 sps:$4 sm:$0xff]   ;;  %v5037_v14 = vld [vmem:[#allocation2 + $0xa0] ss:$20 sps:$4 sm:$0xff]  }
  0x85   :  { %v5035_v13 = vld [vmem:[#allocation2 + $0x324] ss:$20 sps:$4 sm:$0xff]   ;;  %v5038_v15 = vld [vmem:[#allocation2 + $0x320] ss:$20 sps:$4 sm:$0xff]   ;;  %v5039_v16 = vld [vmem:[#allocation2 + $0x7c] ss:$20 sps:$4 sm:$0xff]  }
  0x86   :  { %2008 = vmatpush1.bf16.msra.mxu0 %v5025_v6  ;;  %v5041_v17 = vld [vmem:[#allocation2 + $0x2fc] ss:$20 sps:$4 sm:$0xff]   ;;  %v5043_v18 = vld [vmem:[#allocation2 + $0x78] ss:$20 sps:$4 sm:$0xff]   ;;  %v5045_v20 = vld [vmem:[#allocation2 + $0x54] ss:$20 sps:$4 sm:$0xff]  }
  0x87   :  { %2051 = vmatpush1.bf16.msra.mxu1 %v5026_v7  ;;  %2009 = vmatprep.subr.bf16.mxu0 %v5027_v8  ;;  %v5044_v19 = vld [vmem:[#allocation2 + $0x2f8] ss:$20 sps:$4 sm:$0xff]   ;;  %v5047_v21 = vld [vmem:[#allocation2 + $0x2d4] ss:$20 sps:$4 sm:$0xff]   ;;  %v5049_v22 = vld [vmem:[#allocation2 + $0x50] ss:$20 sps:$4 sm:$0xff]  }
  0x88   :  { %2052 = vmatprep.subr.bf16.mxu1 %v5029_v9  ;;  %v5050_v23 = vld [vmem:[#allocation2 + $0x2d0] ss:$20 sps:$4 sm:$0xff]   ;;  %v5051_v24 = vld [vmem:[#allocation2 + $0x2c] ss:$20 sps:$4 sm:$0xff]   ;;  %v5055_v26 = vld [vmem:[#allocation2 + $0x28] ss:$20 sps:$4 sm:$0xff]  }
  0x89   :  { %v5053_v25 = vld [vmem:[#allocation2 + $0x2ac] ss:$20 sps:$4 sm:$0xff]   ;;  %v5056_v27 = vld [vmem:[#allocation2 + $0x2a8] ss:$20 sps:$4 sm:$0xff]   ;;  %v5057_v28 = vld [vmem:[#allocation2 + $0x4] ss:$20 sps:$4 sm:$0xff]  }
  0x8a   :  { %2010 = vmatpush1.bf16.msra.mxu0 %v5031_v10  ;;  %v5059_v29 = vld [vmem:[#allocation2 + $0x284] ss:$20 sps:$4 sm:$0xff]   ;;  %v5061_v30 = vld [vmem:[#allocation2] ss:$20 sps:$4 sm:$0xff]   ;;  %v5063_v32 = vld [vmem:[#allocation2 + $0x25c] ss:$20 sps:$4 sm:$0xff]  }
  0x8b   :  { %2053 = vmatpush1.bf16.msra.mxu1 %v5032_v11  ;;  %2011 = vmatprep.subr.bf16.mxu0 %v5033_v12  ;;  %v5062_v31 = vld [vmem:[#allocation2 + $0x280] ss:$20 sps:$4 sm:$0xff]   ;;  %v5065_v33 = vld [vmem:[#allocation2 + $0x4dc] ss:$20 sps:$4 sm:$0xff]   ;;  %v5067_v34 = vld [vmem:[#allocation2 + $0x258] ss:$20 sps:$4 sm:$0xff]  }
  0x8c   :  { %2054 = vmatprep.subr.bf16.mxu1 %v5035_v13  ;;  %v5068_v35 = vld [vmem:[#allocation2 + $0x4d8] ss:$20 sps:$4 sm:$0xff]   ;;  %v5069_v36 = vld [vmem:[#allocation2 + $0x234] ss:$20 sps:$4 sm:$0xff]   ;;  %v5073_v38 = vld [vmem:[#allocation2 + $0x230] ss:$20 sps:$4 sm:$0xff]  }
  0x8d   :  { %v5071_v37 = vld [vmem:[#allocation2 + $0x4b4] ss:$20 sps:$4 sm:$0xff]   ;;  %v5074_v39 = vld [vmem:[#allocation2 + $0x4b0] ss:$20 sps:$4 sm:$0xff]   ;;  %v5075_v40 = vld [vmem:[#allocation2 + $0x20c] ss:$20 sps:$4 sm:$0xff]  }
  0x8e   :  { %2012 = vmatpush1.bf16.msra.mxu0 %v5037_v14  ;;  %v5077_v41 = vld [vmem:[#allocation2 + $0x48c] ss:$20 sps:$4 sm:$0xff]   ;;  %v5079_v42 = vld [vmem:[#allocation2 + $0x208] ss:$20 sps:$4 sm:$0xff]   ;;  %v5081_v44 = vld [vmem:[#allocation2 + $0x1e4] ss:$20 sps:$4 sm:$0xff]  }
  0x8f   :  { %2055 = vmatpush1.bf16.msra.mxu1 %v5038_v15  ;;  %2013 = vmatprep.subr.bf16.mxu0 %v5039_v16  ;;  %v5080_v43 = vld [vmem:[#allocation2 + $0x488] ss:$20 sps:$4 sm:$0xff]   ;;  %v5083_v45 = vld [vmem:[#allocation2 + $0x464] ss:$20 sps:$4 sm:$0xff]   ;;  %v5085_v47 = vld [vmem:[#allocation2 + $0x1e0] ss:$20 sps:$4 sm:$0xff]  }
  0x90   :  { %2056 = vmatprep.subr.bf16.mxu1 %v5041_v17  ;;  %v166_v46 = vld [vmem:[%s6162_s0 + $0x8] sm:$0xff]  ;;  %v5086_v48 = vld [vmem:[#allocation2 + $0x460] ss:$20 sps:$4 sm:$0xff]   ;;  %v168_v51 = vld [vmem:[%s6162_s0 + $0x18] sm:$0xff]  ;;  %vm5895_vm0 = vmmov 0  }
  0x91   :  { %v173_v49 = vld [vmem:[%s6162_s0 + $0x40] sm:$0xff]  ;;  %v175_v52 = vld [vmem:[%s6162_s0 + $0x50] sm:$0xff]  ;;  %v5091_v56 = vld [vmem:[#allocation2 + $0x1b8] ss:$20 sps:$4 sm:$0xff]  }
  0x92   :  { %2014 = vmatpush1.bf16.msra.mxu0 %v5043_v18  ;;  %v5992_v50 = vpack.c.bf16 %v173_v49, %v166_v46  ;;  %v5087_v53 = vld [vmem:[#allocation2 + $0x1bc] ss:$20 sps:$4 sm:$0xff]   ;;  %v6000_v55 = vpack.c.bf16 %v175_v52, %v168_v51  ;;  %v5092_v57 = vld [vmem:[#allocation2 + $0x438] ss:$20 sps:$4 sm:$0xff]   ;;  %v5093_v58 = vld [vmem:[#allocation2 + $0x194] ss:$20 sps:$4 sm:$0xff]  }
  0x93   :  { %2057 = vmatpush1.bf16.msra.mxu1 %v5044_v19  ;;  %2015 = vmatprep.subr.bf16.mxu0 %v5045_v20  ;;  %v5089_v54 = vld [vmem:[#allocation2 + $0x43c] ss:$20 sps:$4 sm:$0xff]   ;;  %v5095_v59 = vld [vmem:[#allocation2 + $0x414] ss:$20 sps:$4 sm:$0xff]   ;;  %v5099_v62 = vld [vmem:[#allocation2 + $0x16c] ss:$20 sps:$4 sm:$0xff]  }
  0x94   :  { %2058 = vmatprep.subr.bf16.mxu1 %v5047_v21  ;;  %2037 = vmatprep.mubr.bf16.mxu0 %v5992_v50  ;;  %v5097_v60 = vld [vmem:[#allocation2 + $0x190] ss:$20 sps:$4 sm:$0xff]   ;;  %v5101_v63 = vld [vmem:[#allocation2 + $0x3ec] ss:$20 sps:$4 sm:$0xff]   ;;  %v5103_v0 = vld [vmem:[#allocation2 + $0x168] ss:$20 sps:$4 sm:$0xff]  }
  0x95   :  { %2080 = vmatprep.mubr.bf16.mxu1 %v6000_v55  ;;  %v5098_v61 = vld [vmem:[#allocation2 + $0x410] ss:$20 sps:$4 sm:$0xff]   ;;  %v5104_v1 = vld [vmem:[#allocation2 + $0x3e8] ss:$20 sps:$4 sm:$0xff]   ;;  %v5109_v4 = vld [vmem:[#allocation2 + $0x140] ss:$20 sps:$4 sm:$0xff]  }
  0x96   :  { %2016 = vmatpush1.bf16.msra.mxu0 %v5049_v22  ;;  %v5105_v2 = vld [vmem:[#allocation2 + $0x144] ss:$20 sps:$4 sm:$0xff]   ;;  %v5110_v5 = vld [vmem:[#allocation2 + $0x3c0] ss:$20 sps:$4 sm:$0xff]   ;;  %v5113_v8 = vld [vmem:[#allocation2 + $0x61c] ss:$20 sps:$4 sm:$0xff]  }
  0x97   :  { %2059 = vmatpush1.bf16.msra.mxu1 %v5050_v23  ;;  %2017 = vmatprep.subr.bf16.mxu0 %v5051_v24  ;;  %v5107_v3 = vld [vmem:[#allocation2 + $0x3c4] ss:$20 sps:$4 sm:$0xff]   ;;  %v167_v9 = vld [vmem:[%s6162_s0 + $0x10] sm:$0xff]  ;;  %v174_v10 = vld [vmem:[%s6162_s0 + $0x48] sm:$0xff]  ;;  %v5893_v22 = vmov 0  }
  0x98   :  { %2060 = vmatprep.subr.bf16.mxu1 %v5053_v25  ;;  %v165_v6 = vld [vmem:[%s6162_s0] sm:$0xff]  ;;  %v172_v7 = vld [vmem:[%s6162_s0 + $0x38] sm:$0xff]  ;;  %v6018_v15 = vpack.c.bf16 %v174_v10, %v167_v9  ;;  %v5119_v16 = vld [vmem:[#allocation2 + $0x5f4] ss:$20 sps:$4 sm:$0xff]  }
  0x99   :  { %v5116_v11 = vld [vmem:[#allocation2 + $0x89c] ss:$20 sps:$4 sm:$0xff]   ;;  %v6016_v12 = vpack.c.bf16 %v172_v7, %v165_v6  ;;  %v5111_v13 = vld [vmem:[#allocation2 + $0x618] ss:$20 sps:$4 sm:$0xff]   ;;  %v5122_v17 = vld [vmem:[#allocation2 + $0x874] ss:$20 sps:$4 sm:$0xff]  }
  0x9a   :  { %2018 = vmatpush1.bf16.msra.mxu0 %v5055_v26  ;;  %v5114_v14 = vld [vmem:[#allocation2 + $0x898] ss:$20 sps:$4 sm:$0xff]   ;;  %v5117_v18 = vld [vmem:[#allocation2 + $0x5f0] ss:$20 sps:$4 sm:$0xff]   ;;  %v5123_v23 = vld [vmem:[#allocation2 + $0x5c8] ss:$20 sps:$4 sm:$0xff]  }
  0x9b   :  { %2061 = vmatpush1.bf16.msra.mxu1 %v5056_v27  ;;  %2019 = vmatprep.subr.bf16.mxu0 %v5057_v28  ;;  %v5120_v19 = vld [vmem:[#allocation2 + $0x870] ss:$20 sps:$4 sm:$0xff]   ;;  %v5125_v20 = vld [vmem:[#allocation2 + $0x5cc] ss:$20 sps:$4 sm:$0xff]   ;;  %v5126_v24 = vld [vmem:[#allocation2 + $0x848] ss:$20 sps:$4 sm:$0xff]  }
  0x9c   :  { %2062 = vmatprep.subr.bf16.mxu1 %v5059_v29  ;;  %v5128_v21 = vld [vmem:[#allocation2 + $0x84c] ss:$20 sps:$4 sm:$0xff]   ;;  %v5131_v25 = vld [vmem:[#allocation2 + $0x5a4] ss:$20 sps:$4 sm:$0xff]   ;;  %v5137_v29 = vld [vmem:[#allocation2 + $0x57c] ss:$20 sps:$4 sm:$0xff]  }
  0x9d   :  { %v5134_v26 = vld [vmem:[#allocation2 + $0x824] ss:$20 sps:$4 sm:$0xff]   ;;  %v5129_v27 = vld [vmem:[#allocation2 + $0x5a0] ss:$20 sps:$4 sm:$0xff]   ;;  %v178_v49 = vld [vmem:[%s6162_s0 + $0x68] sm:$0xff] }
  0x9e   :  { %2020 = vmatpush1.bf16.msra.mxu0 %v5061_v30  ;;  %v5132_v28 = vld [vmem:[#allocation2 + $0x820] ss:$20 sps:$4 sm:$0xff]   ;;  %v5140_v30 = vld [vmem:[#allocation2 + $0x7fc] ss:$20 sps:$4 sm:$0xff]   ;;  %v5164_v52 = vld [vmem:[#allocation2 + $0x124] ss:$20 sps:$4 sm:$0xff]  }
  0x9f   :  { %2063 = vmatpush1.bf16.msra.mxu1 %v5062_v31  ;;  %2021 = vmatprep.subr.bf16.mxu0 %v5063_v32  ;;  %v5135_v31 = vld [vmem:[#allocation2 + $0x578] ss:$20 sps:$4 sm:$0xff]   ;;  %v5161_v51 = vld [vmem:[#allocation2 + $0x75c] ss:$20 sps:$4 sm:$0xff]   ;;  %v5191_v9 = vld [vmem:[#allocation2 + $0x694] ss:$20 sps:$4 sm:$0xff]  }
  0xa0   :  { %2064 = vmatprep.subr.bf16.mxu1 %v5065_v33  ;;  %v5138_v32 = vld [vmem:[#allocation2 + $0x7f8] ss:$20 sps:$4 sm:$0xff]   ;;  %v5143_v33 = vld [vmem:[#allocation2 + $0x554] ss:$20 sps:$4 sm:$0xff]   ;;  %v5194_v10 = vld [vmem:[#allocation2 + $0x5c] ss:$20 sps:$4 sm:$0xff]  }
  0xa1   :  { %v5188_v6 = vld [vmem:[#allocation2 + $0x84] ss:$20 sps:$4 sm:$0xff]  }
  0xa2   :  { %2022 = vmatpush2.bf16.msra.mxu0 %v5067_v34  ;;  %v5146_v34 = vld [vmem:[#allocation2 + $0x7d4] ss:$20 sps:$4 sm:$0xff]   ;;  %v5183_v7 = vld [vmem:[#allocation2 + $0x6b8] ss:$20 sps:$4 sm:$0xff]  }
  0xa3   :  { %2065 = vmatpush2.bf16.msra.mxu1 %v5068_v35  ;;  %2023 = vmatprep.subr.bf16.mxu0 %v5069_v36  ;;  %v5141_v35 = vld [vmem:[#allocation2 + $0x550] ss:$20 sps:$4 sm:$0xff]  }
  0xa4   :  { %2066 = vmatprep.subr.bf16.mxu1 %v5071_v37  ;;  %v5144_v36 = vld [vmem:[#allocation2 + $0x7d0] ss:$20 sps:$4 sm:$0xff]   ;;  %v5149_v37 = vld [vmem:[#allocation2 + $0x52c] ss:$20 sps:$4 sm:$0xff]  }
  0xa6   :  { %2024 = vmatpush2.bf16.msra.mxu0 %v5073_v38  ;;  %v5152_v38 = vld [vmem:[#allocation2 + $0x7ac] ss:$20 sps:$4 sm:$0xff]  }
  0xa7   :  { %2067 = vmatpush2.bf16.msra.mxu1 %v5074_v39  ;;  %2025 = vmatprep.subr.bf16.mxu0 %v5075_v40  ;;  %v5147_v39 = vld [vmem:[#allocation2 + $0x528] ss:$20 sps:$4 sm:$0xff]  }
  0xa8   :  { %2068 = vmatprep.subr.bf16.mxu1 %v5077_v41  ;;  %v5150_v40 = vld [vmem:[#allocation2 + $0x7a8] ss:$20 sps:$4 sm:$0xff]  }
  0xa9   :  { %v170_v41 = vld [vmem:[%s6162_s0 + $0x28] sm:$0xff] }
  0xaa   :  { %2026 = vmatpush2.bf16.msra.mxu0 %v5079_v42  ;;  %v5155_v42 = vld [vmem:[#allocation2 + $0x504] ss:$20 sps:$4 sm:$0xff]  }
  0xab   :  { %2069 = vmatpush2.bf16.msra.mxu1 %v5080_v43  ;;  %2027 = vmatprep.subr.bf16.mxu0 %v5081_v44  ;;  %v5158_v43 = vld [vmem:[#allocation2 + $0x784] ss:$20 sps:$4 sm:$0xff]  }
  0xac   :  { %2070 = vmatprep.subr.bf16.mxu1 %v5083_v45  ;;  %v177_v44 = vld [vmem:[%s6162_s0 + $0x60] sm:$0xff] }
  0xad   :  { %v5153_v45 = vld [vmem:[#allocation2 + $0x500] ss:$20 sps:$4 sm:$0xff]   ;;  %v6029_v46 = vpack.c.bf16 %v177_v44, %v170_v41  ;;  %v5225_v41 = vld [vmem:[#allocation2 + $0x1e8] ss:$20 sps:$4 sm:$0xff]   ;;  %v5236_v44 = vld [vmem:[#allocation2 + $0x304] ss:$20 sps:$4 sm:$0xff]  }
  0xae   :  { %2028 = vmatpush2.bf16.msra.mxu0 %v5085_v47  ;;  %v5156_v47 = vld [vmem:[#allocation2 + $0x780] ss:$20 sps:$4 sm:$0xff]  }
  0xaf   :  { %2071 = vmatpush2.bf16.msra.mxu1 %v5086_v48  ;;  %2029 = vmatprep.subr.bf16.mxu0 %v5087_v53  ;;  %v171_v48 = vld [vmem:[%s6162_s0 + $0x30] sm:$0xff] }
  0xb0   :  { %2072 = vmatprep.subr.bf16.mxu1 %v5089_v54  ;;  %v6038_v53 = vpack.c.bf16 %v178_v49, %v171_v48  ;;  %v5159_v54 = vld [vmem:[#allocation2 + $0x758] ss:$20 sps:$4 sm:$0xff]   ;;  %v5239_v48 = vld [vmem:[#allocation2 + $0x19c] ss:$20 sps:$4 sm:$0xff]  }
  0xb1   :  { %v5242_v49 = vld [vmem:[#allocation2 + $0x2dc] ss:$20 sps:$4 sm:$0xff]  }
  0xb2   :  { %2030 = vmatpush2.bf16.msra.mxu0 %v5091_v56  ;;  %v5162_v56 = vld [vmem:[#allocation2 + $0x120] ss:$20 sps:$4 sm:$0xff]  }
  0xb3   :  { %2073 = vmatpush2.bf16.msra.mxu1 %v5092_v57  ;;  %2031 = vmatprep.subr.bf16.mxu0 %v5093_v58  ;;  %v5167_v57 = vld [vmem:[#allocation2 + $0x734] ss:$20 sps:$4 sm:$0xff]   ;;  %v5170_v58 = vld [vmem:[#allocation2 + $0xfc] ss:$20 sps:$4 sm:$0xff]  }
  0xb4   :  { %2074 = vmatprep.subr.bf16.mxu1 %v5095_v59  ;;  %v5165_v59 = vld [vmem:[#allocation2 + $0x730] ss:$20 sps:$4 sm:$0xff]  }
  0xb6   :  { %2032 = vmatpush2.bf16.msra.mxu0 %v5097_v60  ;;  %v5168_v60 = vld [vmem:[#allocation2 + $0xf8] ss:$20 sps:$4 sm:$0xff]  }
  0xb7   :  { %2075 = vmatpush2.bf16.msra.mxu1 %v5098_v61  ;;  %2033 = vmatprep.subr.bf16.mxu0 %v5099_v62  ;;  %v5173_v61 = vld [vmem:[#allocation2 + $0x70c] ss:$20 sps:$4 sm:$0xff]   ;;  %v5176_v62 = vld [vmem:[#allocation2 + $0xd4] ss:$20 sps:$4 sm:$0xff]  }
  0xb8   :  { %2076 = vmatprep.subr.bf16.mxu1 %v5101_v63  ;;  %v5171_v63 = vld [vmem:[#allocation2 + $0x708] ss:$20 sps:$4 sm:$0xff]  }
  0xba   :  { %2034 = vmatpush2.bf16.msra.mxu0 %v5103_v0  ;;  %v5174_v0 = vld [vmem:[#allocation2 + $0xd0] ss:$20 sps:$4 sm:$0xff]  }
  0xbb   :  { %2077 = vmatpush2.bf16.msra.mxu1 %v5104_v1  ;;  %2035 = vmatprep.subr.bf16.mxu0 %v5105_v2  ;;  %v5179_v1 = vld [vmem:[#allocation2 + $0x6e4] ss:$20 sps:$4 sm:$0xff]   ;;  %v5182_v2 = vld [vmem:[#allocation2 + $0xac] ss:$20 sps:$4 sm:$0xff]  }
  0xbc   :  { %2078 = vmatprep.subr.bf16.mxu1 %v5107_v3  ;;  %v5177_v3 = vld [vmem:[#allocation2 + $0x6e0] ss:$20 sps:$4 sm:$0xff]  }
  0xbe   :  { %2036 = vmatpush2.bf16.msra.mxu0 %v5109_v4  ;;  %v5180_v4 = vld [vmem:[#allocation2 + $0xa8] ss:$20 sps:$4 sm:$0xff]  }
  0xbf   :  { %2079 = vmatpush2.bf16.msra.mxu1 %v5110_v5  ;;  %2091 = vmatprep.subr.bf16.mxu0 %v5113_v8  ;;  %v5185_v5 = vld [vmem:[#allocation2 + $0x6bc] ss:$20 sps:$4 sm:$0xff]   ;;  %v5186_v8 = vld [vmem:[#allocation2 + $0x80] ss:$20 sps:$4 sm:$0xff]  }
  0xc0   :  { %2134 = vmatprep.subr.bf16.mxu1 %v5116_v11  ;;  %v5189_v11 = vld [vmem:[#allocation2 + $0x690] ss:$20 sps:$4 sm:$0xff]  }
  0xc1   :  { %2038 = vmatmul.mubr.bf16.vlgmr.msra.gmra.mxu0 %v6016_v12 }
  0xc2   :  { %2081 = vmatmul.mubr.bf16.vlgmr.msra.gmra.mxu1 %v6018_v15  ;;  %2092 = vmatpush1.bf16.msra.mxu0 %v5111_v13  ;;  %v5192_v13 = vld [vmem:[#allocation2 + $0x58] ss:$20 sps:$4 sm:$0xff]  }
  0xc3   :  { %2135 = vmatpush1.bf16.msra.mxu1 %v5114_v14  ;;  %2093 = vmatprep.subr.bf16.mxu0 %v5119_v16  ;;  %v5197_v14 = vld [vmem:[#allocation2 + $0x66c] ss:$20 sps:$4 sm:$0xff]   ;;  %v5200_v16 = vld [vmem:[#allocation2 + $0x34] ss:$20 sps:$4 sm:$0xff]  }
  0xc4   :  { %2136 = vmatprep.subr.bf16.mxu1 %v5122_v17  ;;  %2166 = vmatprep.mubr.bf16.mxu1 %v5893_v22  ;;  %v5195_v17 = vld [vmem:[#allocation2 + $0x668] ss:$20 sps:$4 sm:$0xff]  }
  0xc5   :  { %2123 = vmatprep.mubr.bf16.mxu0 %v6029_v46 }
  0xc6   :  { %2094 = vmatpush1.bf16.msra.mxu0 %v5117_v18  ;;  %v5198_v18 = vld [vmem:[#allocation2 + $0x30] ss:$20 sps:$4 sm:$0xff]  }
  0xc7   :  { %2137 = vmatpush1.bf16.msra.mxu1 %v5120_v19  ;;  %2095 = vmatprep.subr.bf16.mxu0 %v5125_v20  ;;  %v5203_v19 = vld [vmem:[#allocation2 + $0x644] ss:$20 sps:$4 sm:$0xff]   ;;  %v5206_v20 = vld [vmem:[#allocation2 + $0xc] ss:$20 sps:$4 sm:$0xff]  }
  0xc8   :  { %2138 = vmatprep.subr.bf16.mxu1 %v5128_v21  ;;  %v5201_v21 = vld [vmem:[#allocation2 + $0x640] ss:$20 sps:$4 sm:$0xff]  }
  0xca   :  { %2096 = vmatpush1.bf16.msra.mxu0 %v5123_v23  ;;  %v5204_v23 = vld [vmem:[#allocation2 + $0x8] ss:$20 sps:$4 sm:$0xff]  }
  0xcb   :  { %2139 = vmatpush1.bf16.msra.mxu1 %v5126_v24  ;;  %2097 = vmatprep.subr.bf16.mxu0 %v5131_v25  ;;  %v169_v24 = vld [vmem:[%s6162_s0 + $0x20] sm:$0xff]  ;;  %v176_v25 = vld [vmem:[%s6162_s0 + $0x58] sm:$0xff] }
  0xcc   :  { %2140 = vmatprep.subr.bf16.mxu1 %v5134_v26  ;;  %v5209_v26 = vld [vmem:[#allocation2 + $0x264] ss:$20 sps:$4 sm:$0xff]  }
  0xce   :  { %2098 = vmatpush1.bf16.msra.mxu0 %v5129_v27  ;;  %v5212_v27 = vld [vmem:[#allocation2 + $0x3a4] ss:$20 sps:$4 sm:$0xff]  }
  0xcf   :  { %2141 = vmatpush1.bf16.msra.mxu1 %v5132_v28  ;;  %2099 = vmatprep.subr.bf16.mxu0 %v5137_v29  ;;  %v6048_v28 = vpack.c.bf16 %v176_v25, %v169_v24  ;;  %v5207_v29 = vld [vmem:[#allocation2 + $0x260] ss:$20 sps:$4 sm:$0xff]   ;;  %v5285_v24 = vld [vmem:[#allocation2 + $0x418] ss:$20 sps:$4 sm:$0xff]  }
  0xd0   :  { %2142 = vmatprep.subr.bf16.mxu1 %v5140_v30  ;;  %v5210_v30 = vld [vmem:[#allocation2 + $0x3a0] ss:$20 sps:$4 sm:$0xff]   ;;  %v5288_v25 = vld [vmem:[#allocation2 + $0x558] ss:$20 sps:$4 sm:$0xff]  }
  0xd2   :  { %2100 = vmatpush1.bf16.msra.mxu0 %v5135_v31  ;;  %v5215_v31 = vld [vmem:[#allocation2 + $0x23c] ss:$20 sps:$4 sm:$0xff]  }
  0xd3   :  { %2143 = vmatpush1.bf16.msra.mxu1 %v5138_v32  ;;  %2101 = vmatprep.subr.bf16.mxu0 %v5143_v33  ;;  %v5218_v32 = vld [vmem:[#allocation2 + $0x37c] ss:$20 sps:$4 sm:$0xff]   ;;  %v5213_v33 = vld [vmem:[#allocation2 + $0x238] ss:$20 sps:$4 sm:$0xff]  }
  0xd4   :  { %2144 = vmatprep.subr.bf16.mxu1 %v5146_v34  ;;  %v5216_v34 = vld [vmem:[#allocation2 + $0x378] ss:$20 sps:$4 sm:$0xff]  }
  0xd6   :  { %2102 = vmatpush1.bf16.msra.mxu0 %v5141_v35  ;;  %v5221_v35 = vld [vmem:[#allocation2 + $0x214] ss:$20 sps:$4 sm:$0xff]  }
  0xd7   :  { %2145 = vmatpush1.bf16.msra.mxu1 %v5144_v36  ;;  %2103 = vmatprep.subr.bf16.mxu0 %v5149_v37  ;;  %v5224_v36 = vld [vmem:[#allocation2 + $0x354] ss:$20 sps:$4 sm:$0xff]   ;;  %v5219_v37 = vld [vmem:[#allocation2 + $0x210] ss:$20 sps:$4 sm:$0xff]  }
  0xd8   :  { %2146 = vmatprep.subr.bf16.mxu1 %v5152_v38  ;;  %v5222_v38 = vld [vmem:[#allocation2 + $0x350] ss:$20 sps:$4 sm:$0xff]  }
  0xda   :  { %2104 = vmatpush1.bf16.msra.mxu0 %v5147_v39  ;;  %v5227_v39 = vld [vmem:[#allocation2 + $0x1ec] ss:$20 sps:$4 sm:$0xff]  }
  0xdb   :  { %2147 = vmatpush1.bf16.msra.mxu1 %v5150_v40  ;;  %2105 = vmatprep.subr.bf16.mxu0 %v5155_v42  ;;  %v5230_v40 = vld [vmem:[#allocation2 + $0x32c] ss:$20 sps:$4 sm:$0xff]   ;;  %v5228_v42 = vld [vmem:[#allocation2 + $0x328] ss:$20 sps:$4 sm:$0xff]  }
  0xdc   :  { %2148 = vmatprep.subr.bf16.mxu1 %v5158_v43  ;;  %v5233_v43 = vld [vmem:[#allocation2 + $0x1c4] ss:$20 sps:$4 sm:$0xff]  }
  0xde   :  { %2106 = vmatpush1.bf16.msra.mxu0 %v5153_v45  ;;  %v5231_v45 = vld [vmem:[#allocation2 + $0x1c0] ss:$20 sps:$4 sm:$0xff]  }
  0xdf   :  { %2149 = vmatpush1.bf16.msra.mxu1 %v5156_v47  ;;  %2107 = vmatprep.subr.bf16.mxu0 %v5161_v51  ;;  %v5234_v47 = vld [vmem:[#allocation2 + $0x300] ss:$20 sps:$4 sm:$0xff]   ;;  %v5237_v51 = vld [vmem:[#allocation2 + $0x198] ss:$20 sps:$4 sm:$0xff]  }
  0xe0   :  { %2177 = vmatprep.subr.bf16.mxu1 %v5164_v52  ;;  %v5240_v52 = vld [vmem:[#allocation2 + $0x2d8] ss:$20 sps:$4 sm:$0xff]  }
  0xe2   :  { %2167 = vmatmul.mubr.bf16.vlgmr.msra.gmra.mxu1 %v6038_v53  ;;  %2108 = vmatpush2.bf16.msra.mxu0 %v5159_v54  ;;  %v5245_v54 = vld [vmem:[#allocation2 + $0x174] ss:$20 sps:$4 sm:$0xff]  }
  0xe3   :  { %2178 = vmatpush1.bf16.msra.mxu1 %v5162_v56  ;;  %2109 = vmatprep.subr.bf16.mxu0 %v5167_v57  ;;  %v5248_v56 = vld [vmem:[#allocation2 + $0x2b4] ss:$20 sps:$4 sm:$0xff]   ;;  %v5243_v57 = vld [vmem:[#allocation2 + $0x170] ss:$20 sps:$4 sm:$0xff]  }
  0xe4   :  { %2179 = vmatprep.subr.bf16.mxu1 %v5170_v58  ;;  %2209 = vmatprep.mubr.bf16.mxu1 %v5992_v50  ;;  %v5246_v58 = vld [vmem:[#allocation2 + $0x2b0] ss:$20 sps:$4 sm:$0xff]  }
  0xe6   :  { %2110 = vmatpush2.bf16.msra.mxu0 %v5165_v59  ;;  %v5251_v59 = vld [vmem:[#allocation2 + $0x14c] ss:$20 sps:$4 sm:$0xff]  }
  0xe7   :  { %2180 = vmatpush1.bf16.msra.mxu1 %v5168_v60  ;;  %2111 = vmatprep.subr.bf16.mxu0 %v5173_v61  ;;  %v5254_v60 = vld [vmem:[#allocation2 + $0x28c] ss:$20 sps:$4 sm:$0xff]   ;;  %v5249_v61 = vld [vmem:[#allocation2 + $0x148] ss:$20 sps:$4 sm:$0xff]  }
  0xe8   :  { %2181 = vmatprep.subr.bf16.mxu1 %v5176_v62  ;;  %v5252_v62 = vld [vmem:[#allocation2 + $0x288] ss:$20 sps:$4 sm:$0xff]  }
  0xea   :  { %2112 = vmatpush2.bf16.msra.mxu0 %v5171_v63  ;;  %v5257_v63 = vld [vmem:[#allocation2 + $0x4e4] ss:$20 sps:$4 sm:$0xff]  }
  0xeb   :  { %2182 = vmatpush1.bf16.msra.mxu1 %v5174_v0  ;;  %2113 = vmatprep.subr.bf16.mxu0 %v5179_v1  ;;  %v5260_v0 = vld [vmem:[#allocation2 + $0x624] ss:$20 sps:$4 sm:$0xff]   ;;  %v5255_v1 = vld [vmem:[#allocation2 + $0x4e0] ss:$20 sps:$4 sm:$0xff]  }
  0xec   :  { %2183 = vmatprep.subr.bf16.mxu1 %v5182_v2  ;;  %v5258_v2 = vld [vmem:[#allocation2 + $0x620] ss:$20 sps:$4 sm:$0xff]  }
  0xee   :  { %2114 = vmatpush2.bf16.msra.mxu0 %v5177_v3  ;;  %v5263_v3 = vld [vmem:[#allocation2 + $0x4bc] ss:$20 sps:$4 sm:$0xff]  }
  0xef   :  { %2184 = vmatpush1.bf16.msra.mxu1 %v5180_v4  ;;  %2115 = vmatprep.subr.bf16.mxu0 %v5185_v5  ;;  %v5266_v4 = vld [vmem:[#allocation2 + $0x5fc] ss:$20 sps:$4 sm:$0xff]   ;;  %v5261_v5 = vld [vmem:[#allocation2 + $0x4b8] ss:$20 sps:$4 sm:$0xff]  }
  0xf0   :  { %2185 = vmatprep.subr.bf16.mxu1 %v5188_v6  ;;  %v5264_v6 = vld [vmem:[#allocation2 + $0x5f8] ss:$20 sps:$4 sm:$0xff]  }
  0xf2   :  { %2116 = vmatpush2.bf16.msra.mxu0 %v5183_v7  ;;  %v5269_v7 = vld [vmem:[#allocation2 + $0x494] ss:$20 sps:$4 sm:$0xff]  }
  0xf3   :  { %2186 = vmatpush1.bf16.msra.mxu1 %v5186_v8  ;;  %2117 = vmatprep.subr.bf16.mxu0 %v5191_v9  ;;  %v5272_v8 = vld [vmem:[#allocation2 + $0x5d4] ss:$20 sps:$4 sm:$0xff]   ;;  %v5267_v9 = vld [vmem:[#allocation2 + $0x490] ss:$20 sps:$4 sm:$0xff]  }
  0xf4   :  { %2187 = vmatprep.subr.bf16.mxu1 %v5194_v10  ;;  %v5270_v10 = vld [vmem:[#allocation2 + $0x5d0] ss:$20 sps:$4 sm:$0xff]  }
  0xf6   :  { %2118 = vmatpush2.bf16.msra.mxu0 %v5189_v11  ;;  %v5275_v11 = vld [vmem:[#allocation2 + $0x46c] ss:$20 sps:$4 sm:$0xff]  }
  0xf7   :  { %2188 = vmatpush1.bf16.msra.mxu1 %v5192_v13  ;;  %2119 = vmatprep.subr.bf16.mxu0 %v5197_v14  ;;  %v5278_v13 = vld [vmem:[#allocation2 + $0x5ac] ss:$20 sps:$4 sm:$0xff]   ;;  %v5273_v14 = vld [vmem:[#allocation2 + $0x468] ss:$20 sps:$4 sm:$0xff]  }
  0xf8   :  { %2189 = vmatprep.subr.bf16.mxu1 %v5200_v16  ;;  %v5276_v16 = vld [vmem:[#allocation2 + $0x5a8] ss:$20 sps:$4 sm:$0xff]  }
  0xfa   :  { %2120 = vmatpush2.bf16.msra.mxu0 %v5195_v17  ;;  %v5281_v17 = vld [vmem:[#allocation2 + $0x444] ss:$20 sps:$4 sm:$0xff]  }
  0xfb   :  { %2190 = vmatpush1.bf16.msra.mxu1 %v5198_v18  ;;  %2121 = vmatprep.subr.bf16.mxu0 %v5203_v19  ;;  %v5284_v18 = vld [vmem:[#allocation2 + $0x584] ss:$20 sps:$4 sm:$0xff]   ;;  %v5279_v19 = vld [vmem:[#allocation2 + $0x440] ss:$20 sps:$4 sm:$0xff]  }
  0xfc   :  { %2191 = vmatprep.subr.bf16.mxu1 %v5206_v20  ;;  %v5282_v20 = vld [vmem:[#allocation2 + $0x580] ss:$20 sps:$4 sm:$0xff]  }
  0xfe   :  { %2122 = vmatpush2.bf16.msra.mxu0 %v5201_v21  ;;  %v5287_v21 = vld [vmem:[#allocation2 + $0x41c] ss:$20 sps:$4 sm:$0xff]  }
  0xff   :  { %2192 = vmatpush1.bf16.msra.mxu1 %v5204_v23  ;;  %2220 = vmatprep.subr.bf16.mxu0 %v5212_v27  ;;  %v5290_v23 = vld [vmem:[#allocation2 + $0x55c] ss:$20 sps:$4 sm:$0xff]   ;;  %v5296_v27 = vld [vmem:[#allocation2 + $0x534] ss:$20 sps:$4 sm:$0xff]  }
 0x100   :  { %2193 = vmatprep.subr.bf16.mxu1 %v5209_v26  ;;  %v5293_v26 = vld [vmem:[#allocation2 + $0x3f4] ss:$20 sps:$4 sm:$0xff]  }
 0x101   :  { %2124 = vmatmul.mubr.bf16.vlgmr.msra.gmra.mxu0 %v6048_v28 }
 0x102   :  { %2221 = vmatpush1.bf16.msra.mxu0 %v5210_v30  ;;  %2252 = vmatprep.mubr.bf16.mxu0 %v6000_v55  ;;  %v5294_v30 = vld [vmem:[#allocation2 + $0x530] ss:$20 sps:$4 sm:$0xff]  }
 0x103   :  { %2194 = vmatpush2.bf16.msra.mxu1 %v5207_v29  ;;  %2222 = vmatprep.subr.bf16.mxu0 %v5218_v32  ;;  %v5291_v29 = vld [vmem:[#allocation2 + $0x3f0] ss:$20 sps:$4 sm:$0xff]   ;;  %v5302_v32 = vld [vmem:[#allocation2 + $0x50c] ss:$20 sps:$4 sm:$0xff]  }
 0x104   :  { %2195 = vmatprep.subr.bf16.mxu1 %v5215_v31  ;;  %v5299_v31 = vld [vmem:[#allocation2 + $0x3cc] ss:$20 sps:$4 sm:$0xff]  }
 0x106   :  { %2223 = vmatpush1.bf16.msra.mxu0 %v5216_v34  ;;  %v5300_v34 = vld [vmem:[#allocation2 + $0x508] ss:$20 sps:$4 sm:$0xff]  }
 0x107   :  { %2196 = vmatpush2.bf16.msra.mxu1 %v5213_v33  ;;  %2224 = vmatprep.subr.bf16.mxu0 %v5224_v36  ;;  %v5297_v33 = vld [vmem:[#allocation2 + $0x3c8] ss:$20 sps:$4 sm:$0xff]   ;;  %v5308_v36 = vld [vmem:[#allocation2 + $0x8a4] ss:$20 sps:$4 sm:$0xff]  }
 0x108   :  { %2197 = vmatprep.subr.bf16.mxu1 %v5221_v35  ;;  %v5305_v35 = vld [vmem:[#allocation2 + $0x764] ss:$20 sps:$4 sm:$0xff]  }
 0x10a   :  { %2225 = vmatpush1.bf16.msra.mxu0 %v5222_v38  ;;  %v5306_v38 = vld [vmem:[#allocation2 + $0x8a0] ss:$20 sps:$4 sm:$0xff]  }
 0x10b   :  { %2198 = vmatpush2.bf16.msra.mxu1 %v5219_v37  ;;  %2226 = vmatprep.subr.bf16.mxu0 %v5230_v40  ;;  %v5303_v37 = vld [vmem:[#allocation2 + $0x760] ss:$20 sps:$4 sm:$0xff]   ;;  %v5314_v40 = vld [vmem:[#allocation2 + $0x87c] ss:$20 sps:$4 sm:$0xff]  }
 0x10c   :  { %2199 = vmatprep.subr.bf16.mxu1 %v5227_v39  ;;  %v5311_v39 = vld [vmem:[#allocation2 + $0x73c] ss:$20 sps:$4 sm:$0xff]  }
 0x10e   :  { %2227 = vmatpush1.bf16.msra.mxu0 %v5228_v42  ;;  %v5312_v42 = vld [vmem:[#allocation2 + $0x878] ss:$20 sps:$4 sm:$0xff]  }
 0x10f   :  { %2200 = vmatpush2.bf16.msra.mxu1 %v5225_v41  ;;  %2228 = vmatprep.subr.bf16.mxu0 %v5236_v44  ;;  %v5309_v41 = vld [vmem:[#allocation2 + $0x738] ss:$20 sps:$4 sm:$0xff]   ;;  %v5320_v44 = vld [vmem:[#allocation2 + $0x854] ss:$20 sps:$4 sm:$0xff]  }
 0x110   :  { %2201 = vmatprep.subr.bf16.mxu1 %v5233_v43  ;;  %v5317_v43 = vld [vmem:[#allocation2 + $0x714] ss:$20 sps:$4 sm:$0xff]  }
 0x112   :  { %2229 = vmatpush1.bf16.msra.mxu0 %v5234_v47  ;;  %v5318_v47 = vld [vmem:[#allocation2 + $0x850] ss:$20 sps:$4 sm:$0xff]  }
 0x113   :  { %2202 = vmatpush2.bf16.msra.mxu1 %v5231_v45  ;;  %2230 = vmatprep.subr.bf16.mxu0 %v5242_v49  ;;  %v5315_v45 = vld [vmem:[#allocation2 + $0x710] ss:$20 sps:$4 sm:$0xff]   ;;  %v5326_v49 = vld [vmem:[#allocation2 + $0x82c] ss:$20 sps:$4 sm:$0xff]  }
 0x114   :  { %2203 = vmatprep.subr.bf16.mxu1 %v5239_v48  ;;  %v5323_v48 = vld [vmem:[#allocation2 + $0x6ec] ss:$20 sps:$4 sm:$0xff]  }
 0x116   :  { %2231 = vmatpush1.bf16.msra.mxu0 %v5240_v52  ;;  %v5324_v52 = vld [vmem:[#allocation2 + $0x828] ss:$20 sps:$4 sm:$0xff]  }
 0x117   :  { %2204 = vmatpush2.bf16.msra.mxu1 %v5237_v51  ;;  %2232 = vmatprep.subr.bf16.mxu0 %v5248_v56  ;;  %v5321_v51 = vld [vmem:[#allocation2 + $0x6e8] ss:$20 sps:$4 sm:$0xff]   ;;  %v5332_v56 = vld [vmem:[#allocation2 + $0x804] ss:$20 sps:$4 sm:$0xff]  }
 0x118   :  { %2205 = vmatprep.subr.bf16.mxu1 %v5245_v54  ;;  %v5329_v54 = vld [vmem:[#allocation2 + $0x6c4] ss:$20 sps:$4 sm:$0xff]  }
 0x11a   :  { %2233 = vmatpush1.bf16.msra.mxu0 %v5246_v58  ;;  %v5330_v58 = vld [vmem:[#allocation2 + $0x800] ss:$20 sps:$4 sm:$0xff]  }
 0x11b   :  { %2206 = vmatpush2.bf16.msra.mxu1 %v5243_v57  ;;  %2234 = vmatprep.subr.bf16.mxu0 %v5254_v60  ;;  %v5327_v57 = vld [vmem:[#allocation2 + $0x6c0] ss:$20 sps:$4 sm:$0xff]   ;;  %v5338_v60 = vld [vmem:[#allocation2 + $0x7dc] ss:$20 sps:$4 sm:$0xff]  }
 0x11c   :  { %2207 = vmatprep.subr.bf16.mxu1 %v5251_v59  ;;  %v5335_v59 = vld [vmem:[#allocation2 + $0x69c] ss:$20 sps:$4 sm:$0xff]  }
 0x11e   :  { %2235 = vmatpush1.bf16.msra.mxu0 %v5252_v62  ;;  %v5336_v62 = vld [vmem:[#allocation2 + $0x7d8] ss:$20 sps:$4 sm:$0xff]  }
 0x11f   :  { %2208 = vmatpush2.bf16.msra.mxu1 %v5249_v61  ;;  %2236 = vmatprep.subr.bf16.mxu0 %v5257_v63  ;;  %v5333_v61 = vld [vmem:[#allocation2 + $0x698] ss:$20 sps:$4 sm:$0xff]   ;;  %v5341_v63 = vld [vmem:[#allocation2 + $0x674] ss:$20 sps:$4 sm:$0xff]  }
 0x120   :  { %2263 = vmatprep.subr.bf16.mxu1 %v5260_v0  ;;  %v5344_v0 = vld [vmem:[#allocation2 + $0x7b4] ss:$20 sps:$4 sm:$0xff]  }
 0x122   :  { %2210 = vmatmul.mubr.bf16.vlgmr.msra.gmra.mxu1 %v6016_v12  ;;  %2237 = vmatpush2.bf16.msra.mxu0 %v5255_v1  ;;  %v5339_v1 = vld [vmem:[#allocation2 + $0x670] ss:$20 sps:$4 sm:$0xff]  }
 0x123   :  { %2264 = vmatpush1.bf16.msra.mxu1 %v5258_v2  ;;  %2238 = vmatprep.subr.bf16.mxu0 %v5263_v3  ;;  %v5342_v2 = vld [vmem:[#allocation2 + $0x7b0] ss:$20 sps:$4 sm:$0xff]   ;;  %v5347_v3 = vld [vmem:[#allocation2 + $0x64c] ss:$20 sps:$4 sm:$0xff]  }
 0x124   :  { %2265 = vmatprep.subr.bf16.mxu1 %v5266_v4  ;;  %2295 = vmatprep.mubr.bf16.mxu1 %v6029_v46  ;;  %v5350_v4 = vld [vmem:[#allocation2 + $0x78c] ss:$20 sps:$4 sm:$0xff]  }
 0x126   :  { %2239 = vmatpush2.bf16.msra.mxu0 %v5261_v5  ;;  %v5345_v5 = vld [vmem:[#allocation2 + $0x648] ss:$20 sps:$4 sm:$0xff]  }
 0x127   :  { %2266 = vmatpush1.bf16.msra.mxu1 %v5264_v6  ;;  %2240 = vmatprep.subr.bf16.mxu0 %v5269_v7  ;;  %v5348_v6 = vld [vmem:[#allocation2 + $0x788] ss:$20 sps:$4 sm:$0xff]  }
 0x128   :  { %2267 = vmatprep.subr.bf16.mxu1 %v5272_v8  ;;  %v5351_v7 = vld [vmem:[#allocation2 + $0x268] ss:$20 sps:$4 sm:$0xff]  }
 0x129   :  { %v5352_v8 = vld [vmem:[#allocation2 + $0x4e8] ss:$20 sps:$4 sm:$0xff]  }
 0x12a   :  { %2241 = vmatpush2.bf16.msra.mxu0 %v5267_v9  ;;  %v5353_v9 = vld [vmem:[#allocation2 + $0x128] ss:$20 sps:$4 sm:$0xff]  }
 0x12b   :  { %2268 = vmatpush1.bf16.msra.mxu1 %v5270_v10  ;;  %2242 = vmatprep.subr.bf16.mxu0 %v5275_v11  ;;  %v5354_v10 = vld [vmem:[#allocation2 + $0x3a8] ss:$20 sps:$4 sm:$0xff]   ;;  %v5355_v11 = vld [vmem:[#allocation2 + $0x240] ss:$20 sps:$4 sm:$0xff]  }
 0x12c   :  { %2269 = vmatprep.subr.bf16.mxu1 %v5278_v13  ;;  %v5356_v13 = vld [vmem:[#allocation2 + $0x4c0] ss:$20 sps:$4 sm:$0xff]  }
 0x12e   :  { %2243 = vmatpush2.bf16.msra.mxu0 %v5273_v14  ;;  %v5357_v14 = vld [vmem:[#allocation2 + $0x100] ss:$20 sps:$4 sm:$0xff]  }
 0x12f   :  { %2270 = vmatpush1.bf16.msra.mxu1 %v5276_v16  ;;  %2244 = vmatprep.subr.bf16.mxu0 %v5281_v17  ;;  %v5358_v16 = vld [vmem:[#allocation2 + $0x380] ss:$20 sps:$4 sm:$0xff]   ;;  %v5359_v17 = vld [vmem:[#allocation2 + $0x218] ss:$20 sps:$4 sm:$0xff]  }
 0x130   :  { %2271 = vmatprep.subr.bf16.mxu1 %v5284_v18  ;;  %v5360_v18 = vld [vmem:[#allocation2 + $0x498] ss:$20 sps:$4 sm:$0xff]  }
 0x132   :  { %2245 = vmatpush2.bf16.msra.mxu0 %v5279_v19  ;;  %v5361_v19 = vld [vmem:[#allocation2 + $0xd8] ss:$20 sps:$4 sm:$0xff]  }
 0x133   :  { %2272 = vmatpush1.bf16.msra.mxu1 %v5282_v20  ;;  %2246 = vmatprep.subr.bf16.mxu0 %v5287_v21  ;;  %v5362_v20 = vld [vmem:[#allocation2 + $0x358] ss:$20 sps:$4 sm:$0xff]   ;;  %v5363_v21 = vld [vmem:[#allocation2 + $0x1f0] ss:$20 sps:$4 sm:$0xff]  }
 0x134   :  { %2273 = vmatprep.subr.bf16.mxu1 %v5290_v23  ;;  %v5364_v23 = vld [vmem:[#allocation2 + $0x470] ss:$20 sps:$4 sm:$0xff]  }
 0x136   :  { %2247 = vmatpush2.bf16.msra.mxu0 %v5285_v24  ;;  %v5365_v24 = vld [vmem:[#allocation2 + $0xb0] ss:$20 sps:$4 sm:$0xff]  }
 0x137   :  { %2274 = vmatpush1.bf16.msra.mxu1 %v5288_v25  ;;  %2248 = vmatprep.subr.bf16.mxu0 %v5293_v26  ;;  %v5366_v25 = vld [vmem:[#allocation2 + $0x330] ss:$20 sps:$4 sm:$0xff]   ;;  %v5367_v26 = vld [vmem:[#allocation2 + $0x1c8] ss:$20 sps:$4 sm:$0xff]  }
 0x138   :  { %2275 = vmatprep.subr.bf16.mxu1 %v5296_v27  ;;  %v5368_v27 = vld [vmem:[#allocation2 + $0x448] ss:$20 sps:$4 sm:$0xff]  }
 0x13a   :  { %2249 = vmatpush2.bf16.msra.mxu0 %v5291_v29  ;;  %v5369_v29 = vld [vmem:[#allocation2 + $0x88] ss:$20 sps:$4 sm:$0xff]  }
 0x13b   :  { %2276 = vmatpush1.bf16.msra.mxu1 %v5294_v30  ;;  %2250 = vmatprep.subr.bf16.mxu0 %v5299_v31  ;;  %v5370_v30 = vld [vmem:[#allocation2 + $0x308] ss:$20 sps:$4 sm:$0xff]   ;;  %v5371_v31 = vld [vmem:[#allocation2 + $0x1a0] ss:$20 sps:$4 sm:$0xff]  }
 0x13c   :  { %2277 = vmatprep.subr.bf16.mxu1 %v5302_v32  ;;  %v5374_v32 = vld [vmem:[#allocation2 + $0x2e0] ss:$20 sps:$4 sm:$0xff]  }
 0x13e   :  { %2251 = vmatpush2.bf16.msra.mxu0 %v5297_v33  ;;  %v5375_v33 = vld [vmem:[#allocation2 + $0x178] ss:$20 sps:$4 sm:$0xff]  }
 0x13f   :  { %2278 = vmatpush1.bf16.msra.mxu1 %v5300_v34  ;;  %2306 = vmatprep.subr.bf16.mxu0 %v5308_v36  ;;  %v5376_v34 = vld [vmem:[#allocation2 + $0x3f8] ss:$20 sps:$4 sm:$0xff]  }
 0x140   :  { %2279 = vmatprep.subr.bf16.mxu1 %v5305_v35  ;;  %v5377_v35 = vld [vmem:[#allocation2 + $0x38] ss:$20 sps:$4 sm:$0xff]  }
 0x141   :  { %2253 = vmatmul.mubr.bf16.vlgmr.msra.gmra.mxu0 %v6018_v15  ;;  %v5378_v36 = vld [vmem:[#allocation2 + $0x2b8] ss:$20 sps:$4 sm:$0xff]  }
 0x142   :  { %2307 = vmatpush1.bf16.msra.mxu0 %v5306_v38  ;;  %2338 = vmatprep.mubr.bf16.mxu0 %v5893_v22  ;;  %v5380_v38 = vld [vmem:[#allocation2 + $0x3d0] ss:$20 sps:$4 sm:$0xff]  }
 0x143   :  { %2280 = vmatpush2.bf16.msra.mxu1 %v5303_v37  ;;  %2308 = vmatprep.subr.bf16.mxu0 %v5314_v40  ;;  %v5379_v37 = vld [vmem:[#allocation2 + $0x150] ss:$20 sps:$4 sm:$0xff]  }
 0x144   :  { %2281 = vmatprep.subr.bf16.mxu1 %v5311_v39  ;;  %v5381_v39 = vld [vmem:[#allocation2 + $0x10] ss:$20 sps:$4 sm:$0xff]  }
 0x145   :  { %v5382_v40 = vld [vmem:[#allocation2 + $0x290] ss:$20 sps:$4 sm:$0xff]  }
 0x146   :  { %2309 = vmatpush1.bf16.msra.mxu0 %v5312_v42  ;;  %v5384_v42 = vld [vmem:[#allocation2 + $0x628] ss:$20 sps:$4 sm:$0xff]  }
 0x147   :  { %2282 = vmatpush2.bf16.msra.mxu1 %v5309_v41  ;;  %2310 = vmatprep.subr.bf16.mxu0 %v5320_v44  ;;  %v5383_v41 = vld [vmem:[#allocation2 + $0x768] ss:$20 sps:$4 sm:$0xff]   ;;  %v5386_v44 = vld [vmem:[#allocation2 + $0x740] ss:$20 sps:$4 sm:$0xff]  }
 0x148   :  { %2283 = vmatprep.subr.bf16.mxu1 %v5317_v43  ;;  %v5385_v43 = vld [vmem:[#allocation2 + $0x8a8] ss:$20 sps:$4 sm:$0xff]  }
 0x14a   :  { %2311 = vmatpush1.bf16.msra.mxu0 %v5318_v47  ;;  %v5387_v47 = vld [vmem:[#allocation2 + $0x600] ss:$20 sps:$4 sm:$0xff]  }
 0x14b   :  { %2284 = vmatpush2.bf16.msra.mxu1 %v5315_v45  ;;  %2312 = vmatprep.subr.bf16.mxu0 %v5326_v49  ;;  %v5894_v45 = vmov 0.0   ;;  %v5389_v49 = vld [vmem:[#allocation2 + $0x718] ss:$20 sps:$4 sm:$0xff]  }
 0x14c   :  { %2285 = vmatprep.subr.bf16.mxu1 %v5323_v48  ;;  %v5388_v48 = vld [vmem:[#allocation2 + $0x880] ss:$20 sps:$4 sm:$0xff]  }
 0x14e   :  { %2313 = vmatpush1.bf16.msra.mxu0 %v5324_v52  ;;  %v5391_v52 = vld [vmem:[#allocation2 + $0x858] ss:$20 sps:$4 sm:$0xff]  }
 0x14f   :  { %2286 = vmatpush2.bf16.msra.mxu1 %v5321_v51  ;;  %2314 = vmatprep.subr.bf16.mxu0 %v5332_v56  ;;  %v5390_v51 = vld [vmem:[#allocation2 + $0x5d8] ss:$20 sps:$4 sm:$0xff]   ;;  %v5395_v56 = vld [vmem:[#allocation2 + $0x6c8] ss:$20 sps:$4 sm:$0xff]  }
 0x150   :  { %2287 = vmatprep.subr.bf16.mxu1 %v5329_v54  ;;  %v5394_v54 = vld [vmem:[#allocation2 + $0x830] ss:$20 sps:$4 sm:$0xff]  }
 0x152   :  { %2315 = vmatpush1.bf16.msra.mxu0 %v5330_v58  ;;  %v5398_v58 = vld [vmem:[#allocation2 + $0x6a0] ss:$20 sps:$4 sm:$0xff]  }
 0x153   :  { %2288 = vmatpush2.bf16.msra.mxu1 %v5327_v57  ;;  %2316 = vmatprep.subr.bf16.mxu0 %v5338_v60  ;;  %v5397_v57 = vld [vmem:[#allocation2 + $0x808] ss:$20 sps:$4 sm:$0xff]   ;;  %v5400_v60 = vld [vmem:[#allocation2 + $0x7e0] ss:$20 sps:$4 sm:$0xff]  }
 0x154   :  { %2289 = vmatprep.subr.bf16.mxu1 %v5335_v59  ;;  %v5399_v59 = vld [vmem:[#allocation2 + $0x560] ss:$20 sps:$4 sm:$0xff]  }
 0x156   :  { %2317 = vmatpush1.bf16.msra.mxu0 %v5336_v62  ;;  %v5402_v62 = vld [vmem:[#allocation2 + $0x538] ss:$20 sps:$4 sm:$0xff]  }
 0x157   :  { %2290 = vmatpush2.bf16.msra.mxu1 %v5333_v61  ;;  %2318 = vmatprep.subr.bf16.mxu0 %v5344_v0  ;;  %v5401_v61 = vld [vmem:[#allocation2 + $0x678] ss:$20 sps:$4 sm:$0xff]   ;;  %v5404_v0 = vld [vmem:[#allocation2 + $0x650] ss:$20 sps:$4 sm:$0xff]  }
 0x158   :  { %2291 = vmatprep.subr.bf16.mxu1 %v5341_v63  ;;  %v5403_v63 = vld [vmem:[#allocation2 + $0x7b8] ss:$20 sps:$4 sm:$0xff]  }
 0x15a   :  { %2319 = vmatpush1.bf16.msra.mxu0 %v5342_v2  ;;  %v5406_v2 = vld [vmem:[#allocation2 + $0x790] ss:$20 sps:$4 sm:$0xff]  }
 0x15b   :  { %2292 = vmatpush2.bf16.msra.mxu1 %v5339_v1  ;;  %2320 = vmatprep.subr.bf16.mxu0 %v5350_v4  ;;  %v5405_v1 = vld [vmem:[#allocation2 + $0x510] ss:$20 sps:$4 sm:$0xff]  }
 0x15c   :  { %2293 = vmatprep.subr.bf16.mxu1 %v5347_v3  ;;  %v5409_v3 = vld [vmem:[#allocation6 + $0xac] ss:$12 sps:$4 sm:$0xff]  }
 0x15d   :  { %v5457_v4 = vld [vmem:[#allocation6 + $0x22c] ss:$12 sps:$4 sm:$0xff]  }
 0x15e   :  { %2321 = vmatpush1.bf16.msra.mxu0 %v5348_v6  ;;  %v5455_v6 = vld [vmem:[#allocation6 + $0x228] ss:$12 sps:$4 sm:$0xff]  }
 0x15f   :  { %2294 = vmatpush2.bf16.msra.mxu1 %v5345_v5  ;;  %4775 = vmatprep.subr.bf16.mxu0 %v5351_v7  ;;  %v5407_v5 = vld [vmem:[#allocation6 + $0xa8] ss:$12 sps:$4 sm:$0xff]  }
 0x160   :  { %4797 = vmatprep.subr.bf16.mxu1 %v5352_v8  ;;  %v5412_v7 = vld [vmem:[#allocation6 + $0x94] ss:$12 sps:$4 sm:$0xff]  }
 0x161   :  { %2339 = vmatmul.mubr.bf16.vlgmr.msra.gmra.mxu0 %v6038_v53  ;;  %v5460_v8 = vld [vmem:[#allocation6 + $0x214] ss:$12 sps:$4 sm:$0xff]  }
 0x162   :  { %2296 = vmatmul.mubr.bf16.vlgmr.msra.gmra.mxu1 %v6048_v28  ;;  %4776 = vmatpush3.bf16.msra.mxu0 %v5353_v9  ;;  %v5410_v9 = vld [vmem:[#allocation6 + $0x90] ss:$12 sps:$4 sm:$0xff]  }
 0x163   :  { %4798 = vmatpush3.bf16.msra.mxu1 %v5354_v10  ;;  %4777 = vmatprep.subr.bf16.mxu0 %v5355_v11  ;;  %v5415_v10 = vld [vmem:[#allocation6 + $0x7c] ss:$12 sps:$4 sm:$0xff]   ;;  %v524_v11 = vlaneseq }
 0x164   :  { %4799 = vmatprep.subr.bf16.mxu1 %v5356_v13  ;;  %2381 = vmatprep.mubr.bf16.mxu0 %v5992_v50  ;;  %v5372_v50 = vld [vmem:[#allocation2 + $0x420] ss:$20 sps:$4 sm:$0xff]  }
 0x165   :  { %2422 = vmatprep.mubr.bf16.mxu1 %v6000_v55  ;;  %v5373_v55 = vld [vmem:[#allocation2 + $0x60] ss:$20 sps:$4 sm:$0xff]  }
 0x166   :  { %4778 = vmatpush3.bf16.msra.mxu0 %v5357_v14  ;;  %v5458_v13 = vld [vmem:[#allocation6 + $0x210] ss:$12 sps:$4 sm:$0xff]  }
 0x167   :  { %4800 = vmatpush3.bf16.msra.mxu1 %v5358_v16  ;;  %4779 = vmatprep.subr.bf16.mxu0 %v5359_v17  ;;  %v5463_v14 = vld [vmem:[#allocation6 + $0x1fc] ss:$12 sps:$4 sm:$0xff]   ;;  %v5413_v16 = vld [vmem:[#allocation6 + $0x78] ss:$12 sps:$4 sm:$0xff]  }
 0x168   :  { %4801 = vmatprep.subr.bf16.mxu1 %v5360_v18  ;;  %v5418_v17 = vld [vmem:[#allocation6 + $0x64] ss:$12 sps:$4 sm:$0xff]   ;;  %v6075_v18 = vshrl.u32 %v524_v11, 7 }
 0x169   :  { %v5442_v11 = vld [vmem:[#allocation6 + $0x124] ss:$12 sps:$4 sm:$0xff]  }
 0x16a   :  { %4780 = vmatpush3.bf16.msra.mxu0 %v5361_v19  ;;  %v5461_v19 = vld [vmem:[#allocation6 + $0x1f8] ss:$12 sps:$4 sm:$0xff]  }
 0x16b   :  { %4802 = vmatpush3.bf16.msra.mxu1 %v5362_v20  ;;  %4781 = vmatprep.subr.bf16.mxu0 %v5363_v21  ;;  %v5416_v20 = vld [vmem:[#allocation6 + $0x60] ss:$12 sps:$4 sm:$0xff]   ;;  %v6078_v21 = vsub.s32 1, %v6075_v18 }
 0x16c   :  { %4803 = vmatprep.subr.bf16.mxu1 %v5364_v23  ;;  %v5464_v23 = vld [vmem:[#allocation6 + $0x1e0] ss:$12 sps:$4 sm:$0xff]  }
 0x16e   :  { %4782 = vmatpush3.bf16.msra.mxu0 %v5365_v24  ;;  %v5469_v24 = vld [vmem:[#allocation6 + $0x1cc] ss:$12 sps:$4 sm:$0xff]  }
 0x16f   :  { %4804 = vmatpush3.bf16.msra.mxu1 %v5366_v25  ;;  %4783 = vmatprep.subr.bf16.mxu0 %v5367_v26  ;;  %v5419_v25 = vld [vmem:[#allocation6 + $0x48] ss:$12 sps:$4 sm:$0xff]  }
 0x170   :  { %4805 = vmatprep.subr.bf16.mxu1 %v5368_v27  ;;  %v5424_v26 = vld [vmem:[#allocation6 + $0x34] ss:$12 sps:$4 sm:$0xff]  }
 0x171   :  { %v5467_v27 = vld [vmem:[#allocation6 + $0x1c8] ss:$12 sps:$4 sm:$0xff]  }
 0x172   :  { %4784 = vmatpush3.bf16.msra.mxu0 %v5369_v29 }
 0x173   :  { %4806 = vmatpush3.bf16.msra.mxu1 %v5370_v30  ;;  %4785 = vmatprep.subr.bf16.mxu0 %v5371_v31  ;;  %v5472_v30 = vld [vmem:[#allocation6 + $0x1b4] ss:$12 sps:$4 sm:$0xff]   ;;  %v5422_v31 = vld [vmem:[#allocation6 + $0x30] ss:$12 sps:$4 sm:$0xff]  }
 0x174   :  { %4807 = vmatprep.subr.bf16.mxu1 %v5372_v50  ;;  %v5427_v50 = vld [vmem:[#allocation6 + $0x1c] ss:$12 sps:$4 sm:$0xff]  }
 0x176   :  { %4786 = vmatpush3.bf16.msra.mxu0 %v5373_v55  ;;  %v5470_v55 = vld [vmem:[#allocation6 + $0x1b0] ss:$12 sps:$4 sm:$0xff]  }
 0x177   :  { %4808 = vmatpush3.bf16.msra.mxu1 %v5374_v32  ;;  %4787 = vmatprep.subr.bf16.mxu0 %v5375_v33 }
 0x178   :  { %4809 = vmatprep.subr.bf16.mxu1 %v5376_v34  ;;  %v5475_v34 = vld [vmem:[#allocation6 + $0x19c] ss:$12 sps:$4 sm:$0xff]  }
 0x17a   :  { %4788 = vmatpush3.bf16.msra.mxu0 %v5377_v35  ;;  %v5425_v35 = vld [vmem:[#allocation6 + $0x18] ss:$12 sps:$4 sm:$0xff]  }
 0x17b   :  { %4810 = vmatpush3.bf16.msra.mxu1 %v5378_v36  ;;  %4789 = vmatprep.subr.bf16.mxu0 %v5379_v37  ;;  %v6084_v36 = vld [vmem:[#allocation4] sm:$0x1f]  ;;  %v5430_v37 = vld [vmem:[#allocation6 + $0x4] ss:$12 sps:$4 sm:$0xff]  }
 0x17c   :  { %4811 = vmatprep.subr.bf16.mxu1 %v5380_v38  ;;  %v5473_v38 = vld [vmem:[#allocation6 + $0x198] ss:$12 sps:$4 sm:$0xff]  }
 0x17e   :  { %4790 = vmatpush3.bf16.msra.mxu0 %v5381_v39 }
 0x17f   :  { %4812 = vmatpush3.bf16.msra.mxu1 %v5382_v40  ;;  %4819 = vmatprep.subr.bf16.mxu0 %v5383_v41  ;;  %v5478_v41 = vld [vmem:[#allocation6 + $0x184] ss:$12 sps:$4 sm:$0xff]  }
 0x180   :  { %4934 = vmatprep.subr.bf16.mxu1 %v5894_v45 }
 0x181   :  { %2382 = vmatmul.mubr.bf16.vlgmr.msra.gmra.mxu0 %v6016_v12  ;;  %v5392_v12 = vld [vmem:[#allocation2 + $0x6f0] ss:$20 sps:$4 sm:$0xff]   ;;  %v6082_v32 = vpop.f32.mrf.mxu0 }
 0x182   :  { %2423 = vmatmul.mubr.bf16.vlgmr.msra.gmra.mxu1 %v6018_v15  ;;  %4820 = vmatpush3.bf16.msra.mxu0 %v5384_v42  ;;  %v5393_v15 = vld [vmem:[#allocation2 + $0x5b0] ss:$20 sps:$4 sm:$0xff]   ;;  %v6080_v29 = vpop.f32.mrf.mxu1 }
 0x183   :  { %4935 = vmatpush3.bf16.msra.mxu1 %v5385_v43  ;;  %4821 = vmatprep.subr.bf16.mxu0 %v5386_v44  ;;  %v2041_v39 = vpop.f32.mrf.mxu0  ;;  %v5428_v42 = vld [vmem:[#allocation6] ss:$12 sps:$4 sm:$0xff]   ;;  %v531_v44 = vrot.slane %v6084_v36, %v6078_v21 }
 0x184   :  { %4936 = vmatprep.subr.bf16.mxu1 %v5894_v45  ;;  %2463 = vmatprep.mubr.bf16.mxu0 %v6029_v46  ;;  %v5396_v46 = vld [vmem:[#allocation2 + $0x588] ss:$20 sps:$4 sm:$0xff]   ;;  %v2084_v33 = vpop.f32.mrf.mxu1 }
 0x185   :  { %4950 = vmatprep.mubr.msk.bf16.mxu1 %vm5895_vm0, %v5894_v45  ;;  %v5433_v43 = vld [vmem:[#allocation6 + $0x16c] ss:$12 sps:$4 sm:$0xff]  }
 0x186   :  { %4822 = vmatpush3.bf16.msra.mxu0 %v5387_v47  ;;  %v6086_v40 = vpop.f32.mrf.mxu1  ;;  %v5476_v47 = vld [vmem:[#allocation6 + $0x180] ss:$12 sps:$4 sm:$0xff]  }
 0x187   :  { %4937 = vmatpush3.bf16.msra.mxu1 %v5388_v48  ;;  %4823 = vmatprep.subr.bf16.mxu0 %v5389_v49  ;;  %v2043_v48 = vpop.f32.mrf.mxu0 }
 0x188   :  { %4938 = vmatprep.subr.bf16.mxu1 %v5894_v45  ;;  %v2088_v49 = vpop.f32.mrf.mxu1 }
 0x18a   :  { %4824 = vmatpush3.bf16.msra.mxu0 %v5390_v51  ;;  %v5481_v51 = vld [vmem:[#allocation6 + $0x2ec] ss:$12 sps:$4 sm:$0xff]  }
 0x18b   :  { %4939 = vmatpush3.bf16.msra.mxu1 %v5391_v52  ;;  %4825 = vmatprep.subr.bf16.mxu0 %v5392_v12  ;;  %v2042_v12 = vadd.f32 %v2041_v39, %v531_v44 }
 0x18c   :  { %4940 = vmatprep.subr.bf16.mxu1 %v5894_v45 }
 0x18e   :  { %4826 = vmatpush3.bf16.msra.mxu0 %v5393_v15  ;;  %v5431_v15 = vld [vmem:[#allocation6 + $0x168] ss:$12 sps:$4 sm:$0xff]  }
 0x18f   :  { %4941 = vmatpush3.bf16.msra.mxu1 %v5394_v54  ;;  %4827 = vmatprep.subr.bf16.mxu0 %v5395_v56  ;;  %v5479_v54 = vld [vmem:[#allocation6 + $0x2e8] ss:$12 sps:$4 sm:$0xff]   ;;  %v2045_v56 = vpop.f32.mrf.mxu0 }
 0x190   :  { %4942 = vmatprep.subr.bf16.mxu1 %v5894_v45 }
 0x192   :  { %4828 = vmatpush3.bf16.msra.mxu0 %v5396_v46  ;;  %v5436_v46 = vld [vmem:[#allocation6 + $0x154] ss:$12 sps:$4 sm:$0xff]  }
 0x193   :  { %4943 = vmatpush3.bf16.msra.mxu1 %v5397_v57  ;;  %4829 = vmatprep.subr.bf16.mxu0 %v5398_v58  ;;  %v5484_v57 = vld [vmem:[#allocation6 + $0x2d4] ss:$12 sps:$4 sm:$0xff]  }
 0x194   :  { %4944 = vmatprep.subr.bf16.mxu1 %v5894_v45 }
 0x196   :  { %4830 = vmatpush3.bf16.msra.mxu0 %v5399_v59 }
 0x197   :  { %4945 = vmatpush3.bf16.msra.mxu1 %v5400_v60  ;;  %4831 = vmatprep.subr.bf16.mxu0 %v5401_v61  ;;  %v2085_v60 = vadd.f32 %v2084_v33, %v2042_v12  ;;  %v2046_v61 = vadd.f32 %v2045_v56, %v531_v44  ;;  %v5448_v33 = vld [vmem:[#allocation6 + $0xf4] ss:$12 sps:$4 sm:$0xff]   ;;  %v5449_v44 = vld [vmem:[#allocation6 + $0xd8] ss:$12 sps:$4 sm:$0xff]  }
 0x198   :  { %4946 = vmatprep.subr.bf16.mxu1 %v5894_v45  ;;  %v5500_v12 = vld [vmem:[#allocation6 + $0x240] ss:$12 sps:$4 sm:$0xff]  }
 0x199   :  { %v5521_v56 = vld [vmem:[#allocation6 + $0x3ac] ss:$12 sps:$4 sm:$0xff]  }
 0x19a   :  { %4832 = vmatpush3.bf16.msra.mxu0 %v5402_v62  ;;  %v5434_v62 = vld [vmem:[#allocation6 + $0x150] ss:$12 sps:$4 sm:$0xff]  }
 0x19b   :  { %4947 = vmatpush3.bf16.msra.mxu1 %v5403_v63  ;;  %4833 = vmatprep.subr.bf16.mxu0 %v5404_v0  ;;  %v5482_v63 = vld [vmem:[#allocation6 + $0x2d0] ss:$12 sps:$4 sm:$0xff]  }
 0x19c   :  { %4948 = vmatprep.subr.bf16.mxu1 %v5894_v45 }
 0x19e   :  { %4834 = vmatpush3.bf16.msra.mxu0 %v5405_v1  ;;  %v5439_v1 = vld [vmem:[#allocation6 + $0x13c] ss:$12 sps:$4 sm:$0xff]  }
 0x19f   :  { %4949 = vmatpush3.bf16.msra.mxu1 %v5406_v2  ;;  %3345 = vmatprep.subr.bf16.mxu0 %v5409_v3  ;;  %v5487_v2 = vld [vmem:[#allocation6 + $0x2bc] ss:$12 sps:$4 sm:$0xff]  }
 0x1a0   :  { %3388 = vmatprep.subr.bf16.mxu1 %v5457_v4 }
 0x1a1   :  { %2464 = vmatmul.mubr.bf16.vlgmr.msra.gmra.mxu0 %v6048_v28  ;;  %v5466_v28 = vld [vmem:[#allocation6 + $0x1e4] ss:$12 sps:$4 sm:$0xff]  }
 0x1a2   :  { %4951 = vmatmul.mubr.bf16.vlgmr.msra.gmra.mxu1 %v6038_v53  ;;  %3346 = vmatpush1.bf16.msra.mxu0 %v5407_v5  ;;  %v5421_v53 = vld [vmem:[#allocation6 + $0x4c] ss:$12 sps:$4 sm:$0xff]   ;;  %v6090_v52 = vpop.f32.mrf.mxu1 }
 0x1a3   :  { %3389 = vmatpush1.bf16.msra.mxu1 %v5455_v6  ;;  %3347 = vmatprep.subr.bf16.mxu0 %v5412_v7  ;;  %v2089_v6 = vadd.f32 %v2088_v49, %v2046_v61  ;;  %v5437_v7 = vld [vmem:[#allocation6 + $0x138] ss:$12 sps:$4 sm:$0xff]  }
 0x1a4   :  { %3390 = vmatprep.subr.bf16.mxu1 %v5460_v8  ;;  %v2170_v58 = vpop.f32.mrf.mxu1  ;;  %v5485_v8 = vld [vmem:[#allocation6 + $0x2b8] ss:$12 sps:$4 sm:$0xff]  }
 0x1a5   :  { %v5502_v49 = vld [vmem:[#allocation6 + $0x244] ss:$12 sps:$4 sm:$0xff]  }
 0x1a6   :  { %3348 = vmatpush1.bf16.msra.mxu0 %v5410_v9  ;;  %v2172_v4 = vpop.f32.mrf.mxu1  ;;  %v6095_v9 = vsub.s32 0, %v6075_v18  ;;  %v5527_v61 = vld [vmem:[#allocation6 + $0x378] ss:$12 sps:$4 sm:$0xff]  }
 0x1a7   :  { %3391 = vmatpush1.bf16.msra.mxu1 %v5458_v13  ;;  %3349 = vmatprep.subr.bf16.mxu0 %v5415_v10  ;;  %v5490_v13 = vld [vmem:[#allocation6 + $0x2a4] ss:$12 sps:$4 sm:$0xff]  }
 0x1a8   :  { %3392 = vmatprep.subr.bf16.mxu1 %v5463_v14 }
 0x1aa   :  { %3350 = vmatpush1.bf16.msra.mxu0 %v5413_v16 }
 0x1ab   :  { %3393 = vmatpush1.bf16.msra.mxu1 %v5461_v19  ;;  %3351 = vmatprep.subr.bf16.mxu0 %v5418_v17  ;;  %v2174_v17 = vpop.f32.mrf.mxu1 }
 0x1ac   :  { %3394 = vmatprep.subr.bf16.mxu1 %v5466_v28  ;;  %v5440_v28 = vld [vmem:[#allocation6 + $0x120] ss:$12 sps:$4 sm:$0xff]  }
 0x1ae   :  { %3352 = vmatpush1.bf16.msra.mxu0 %v5416_v20  ;;  %v5488_v20 = vld [vmem:[#allocation6 + $0x2a0] ss:$12 sps:$4 sm:$0xff]  }
 0x1af   :  { %3395 = vmatpush1.bf16.msra.mxu1 %v5464_v23  ;;  %3353 = vmatprep.subr.bf16.mxu0 %v5421_v53  ;;  %v527_v53 = vrot.slane %v6084_v36, %v6095_v9  ;;  %v5445_v23 = vld [vmem:[#allocation6 + $0x10c] ss:$12 sps:$4 sm:$0xff]  }
 0x1b0   :  { %3396 = vmatprep.subr.bf16.mxu1 %v5469_v24  ;;  %v5493_v24 = vld [vmem:[#allocation6 + $0x28c] ss:$12 sps:$4 sm:$0xff]  }
 0x1b2   :  { %3354 = vmatpush1.bf16.msra.mxu0 %v5419_v25 }
 0x1b3   :  { %3397 = vmatpush1.bf16.msra.mxu1 %v5467_v27  ;;  %3355 = vmatprep.subr.bf16.mxu0 %v5424_v26  ;;  %v2044_v27 = vadd.f32 %v2043_v48, %v527_v53 }
 0x1b4   :  { %3398 = vmatprep.subr.bf16.mxu1 %v5472_v30 }
 0x1b6   :  { %3356 = vmatpush1.bf16.msra.mxu0 %v5422_v31  ;;  %v5443_v31 = vld [vmem:[#allocation6 + $0x108] ss:$12 sps:$4 sm:$0xff]  }
 0x1b7   :  { %3399 = vmatpush1.bf16.msra.mxu1 %v5470_v55  ;;  %3357 = vmatprep.subr.bf16.mxu0 %v5427_v50  ;;  %v5491_v50 = vld [vmem:[#allocation6 + $0x288] ss:$12 sps:$4 sm:$0xff]   ;;  %v2040_v55 = vadd.f32 %v6082_v32, %v527_v53 }
 0x1b8   :  { %3400 = vmatprep.subr.bf16.mxu1 %v5475_v34  ;;  %v5496_v34 = vld [vmem:[#allocation6 + $0x274] ss:$12 sps:$4 sm:$0xff]  }
 0x1b9   :  { %v2083_v39 = vadd.f32 %v6080_v29, %v2040_v55  ;;  %v5452_v29 = vld [vmem:[#allocation6 + $0xc0] ss:$12 sps:$4 sm:$0xff]  }
 0x1ba   :  { %3358 = vmatpush1.bf16.msra.mxu0 %v5425_v35  ;;  %v2087_v35 = vadd.f32 %v6086_v40, %v2044_v27  ;;  %v5454_v40 = vld [vmem:[#allocation6 + $0xc4] ss:$12 sps:$4 sm:$0xff]  }
 0x1bb   :  { %3401 = vmatpush1.bf16.msra.mxu1 %v5473_v38  ;;  %3359 = vmatprep.subr.bf16.mxu0 %v5430_v37  ;;  %v5446_v37 = vld [vmem:[#allocation6 + $0xf0] ss:$12 sps:$4 sm:$0xff]  }
 0x1bc   :  { %3402 = vmatprep.subr.bf16.mxu1 %v5478_v41  ;;  %v5494_v38 = vld [vmem:[#allocation6 + $0x270] ss:$12 sps:$4 sm:$0xff]  }
 0x1be   :  { %3360 = vmatpush1.bf16.msra.mxu0 %v5428_v42  ;;  %v5451_v42 = vld [vmem:[#allocation6 + $0xdc] ss:$12 sps:$4 sm:$0xff]  }
 0x1bf   :  { %3403 = vmatpush1.bf16.msra.mxu1 %v5476_v47  ;;  %3361 = vmatprep.subr.bf16.mxu0 %v5433_v43  ;;  %v5499_v43 = vld [vmem:[#allocation6 + $0x25c] ss:$12 sps:$4 sm:$0xff]   ;;  %v5497_v47 = vld [vmem:[#allocation6 + $0x258] ss:$12 sps:$4 sm:$0xff]  }
 0x1c0   :  { %3404 = vmatprep.subr.bf16.mxu1 %v5481_v51 }
 0x1c1   :  { %v6092_v59 = vpop.f32.mrf.mxu0 }
 0x1c2   :  { %3362 = vmatpush2.bf16.msra.mxu0 %v5431_v15  ;;  %v2126_v32 = vadd.f32 %v6092_v59, %v2083_v39  ;;  %v5525_v59 = vld [vmem:[#allocation6 + $0x394] ss:$12 sps:$4 sm:$0xff]  }
 0x1c3   :  { %3405 = vmatpush2.bf16.msra.mxu1 %v5479_v54  ;;  %v2127_v0 = vpop.f32.mrf.mxu0  ;;  %3363 = vmatprep.subr.bf16.mxu0 %v5436_v46  ;;  %v5503_v54 = vld [vmem:[#allocation6 + $0x170] ss:$12 sps:$4 sm:$0xff]  }
 0x1c4   :  { %3406 = vmatprep.subr.bf16.mxu1 %v5484_v57  ;;  %v2128_v3 = vadd.f32 %v2127_v0, %v2085_v60  ;;  %v2169_v51 = vadd.f32 %v6090_v52, %v2126_v32  ;;  %v5519_v57 = vld [vmem:[#allocation6 + $0x3a8] ss:$12 sps:$4 sm:$0xff]   ;;  %v5523_v52 = vld [vmem:[#allocation6 + $0x390] ss:$12 sps:$4 sm:$0xff]   ;;  %v5537_v0 = vld [vmem:[#allocation6 + $0x34c] ss:$12 sps:$4 sm:$0xff]  }
 0x1c5   :  { %v2129_v5 = vpop.f32.mrf.mxu0  ;;  %v5529_v60 = vld [vmem:[#allocation6 + $0x37c] ss:$12 sps:$4 sm:$0xff]  }
 0x1c6   :  { %3364 = vmatpush2.bf16.msra.mxu0 %v5434_v62  ;;  %v2171_v14 = vadd.f32 %v2170_v58, %v2128_v3  ;;  %v2130_v41 = vadd.f32 %v2129_v5, %v2087_v35  ;;  %v2513_v46 = vmax.f32 %v2169_v51, 0.0  ;;  %v5533_v62 = vld [vmem:[#allocation6 + $0x364] ss:$12 sps:$4 sm:$0xff]  }
 0x1c7   :  { %3407 = vmatpush2.bf16.msra.mxu1 %v5482_v63  ;;  %v2131_v10 = vpop.f32.mrf.mxu0  ;;  %3365 = vmatprep.subr.bf16.mxu0 %v5439_v1  ;;  %v5531_v63 = vld [vmem:[#allocation6 + $0x360] ss:$12 sps:$4 sm:$0xff]   ;;  %v5535_v1 = vld [vmem:[#allocation6 + $0x348] ss:$12 sps:$4 sm:$0xff]   ;;  %v5539_v3 = vld [vmem:[#allocation6 + $0x330] ss:$12 sps:$4 sm:$0xff]  }
 0x1c8   :  { %3408 = vmatprep.subr.bf16.mxu1 %v5487_v2  ;;  %v2132_v16 = vadd.f32 %v2131_v10, %v2089_v6  ;;  %v2514_v25 = vmax.f32 %v2171_v14, 0.0  ;;  %v2173_v48 = vadd.f32 %v2172_v4, %v2130_v41  ;;  %v5541_v2 = vld [vmem:[#allocation6 + $0x334] ss:$12 sps:$4 sm:$0xff]   ;;  %v5545_v4 = vld [vmem:[#allocation6 + $0x31c] ss:$12 sps:$4 sm:$0xff]  }
 0x1c9   :  { %v5543_v5 = vld [vmem:[#allocation6 + $0x318] ss:$12 sps:$4 sm:$0xff]  }
 0x1ca   :  { %v2175_v19 = vadd.f32 %v2174_v17, %v2132_v16  ;;  %3366 = vmatpush2.bf16.msra.mxu0 %v5437_v7  ;;  %v2518_v15 = vmax.f32 %v2173_v48, 0.0  ;;  %v5549_v6 = vld [vmem:[#allocation6 + $0x304] ss:$12 sps:$4 sm:$0xff]   ;;  %v5547_v7 = vld [vmem:[#allocation6 + $0x300] ss:$12 sps:$4 sm:$0xff]   ;;  %v538_v16 = vsub.s32 3, %v6075_v18 }
 0x1cb   :  { %3409 = vmatpush2.bf16.msra.mxu1 %v5485_v8  ;;  %3367 = vmatprep.subr.bf16.mxu0 %v5442_v11  ;;  %v5551_v8 = vld [vmem:[#allocation6 + $0x2f0] ss:$12 sps:$4 sm:$0xff]   ;;  %v534_v17 = vsub.s32 2, %v6075_v18 }
 0x1cc   :  { %3410 = vmatprep.subr.bf16.mxu1 %v5490_v13  ;;  %v2519_v26 = vmax.f32 %v2175_v19, 0.0  ;;  %v6107_v58 = vpack.c.bf16 %v2518_v15, %v2513_v46 }
 0x1cd   :  { %v535_v53 = vrot.slane %v6084_v36, %v534_v17 }
 0x1ce   :  { %3368 = vmatpush2.bf16.msra.mxu0 %v5440_v28  ;;  %v6099_v30 = vpack.c.bf16 %v2519_v26, %v2514_v25 }
 0x1cf   :  { %3411 = vmatpush2.bf16.msra.mxu1 %v5488_v20  ;;  %3369 = vmatprep.subr.bf16.mxu0 %v5445_v23  ;;  %v539_v20 = vrot.slane %v6084_v36, %v538_v16 }
 0x1d0   :  { %3412 = vmatprep.subr.bf16.mxu1 %v5493_v24  ;;  %3377 = vmatprep.mubr.bf16.mxu0 %v6099_v30 }
 0x1d2   :  { %3370 = vmatpush2.bf16.msra.mxu0 %v5443_v31 }
 0x1d3   :  { %3413 = vmatpush2.bf16.msra.mxu1 %v5491_v50  ;;  %3371 = vmatprep.subr.bf16.mxu0 %v5448_v33 }
 0x1d4   :  { %3414 = vmatprep.subr.bf16.mxu1 %v5496_v34 }
 0x1d6   :  { %3372 = vmatpush2.bf16.msra.mxu0 %v5446_v37 }
 0x1d7   :  { %3415 = vmatpush2.bf16.msra.mxu1 %v5494_v38  ;;  %3373 = vmatprep.subr.bf16.mxu0 %v5451_v42 }
 0x1d8   :  { %3416 = vmatprep.subr.bf16.mxu1 %v5499_v43 }
 0x1da   :  { %3374 = vmatpush2.bf16.msra.mxu0 %v5449_v44 }
 0x1db   :  { %3417 = vmatpush2.bf16.msra.mxu1 %v5497_v47  ;;  %3375 = vmatprep.subr.bf16.mxu0 %v5454_v40 }
 0x1dc   :  { %3418 = vmatprep.subr.bf16.mxu1 %v5502_v49 }
 0x1de   :  { %3376 = vmatpush2.bf16.msra.mxu0 %v5452_v29 }
 0x1df   :  { %3419 = vmatpush2.bf16.msra.mxu1 %v5500_v12  ;;  %3431 = vmatprep.subr.bf16.mxu0 %v5521_v56 }
 0x1e0   :  { %4850 = vmatprep.subr.bf16.mxu1 %v5503_v54 }
 0x1e1   :  { %3378 = vmatmul.mubr.bf16.vlgmr.msra.gmra.mxu0 %v6107_v58 }
 0x1e2   :  { %3432 = vmatpush1.bf16.msra.mxu0 %v5519_v57  ;;  %3463 = vmatprep.mubr.bf16.mxu0 %v5893_v22  ;;  %v2211_v10 = vpop.f32.mrf.mxu1 }
 0x1e3   :  { %3433 = vmatprep.subr.bf16.mxu0 %v5525_v59  ;;  %v2212_v26 = vadd.f32 %v2211_v10, %v535_v53  ;;  %v5504_v59 = vld [vmem:[#allocation6 + $0xb0] ss:$12 sps:$4 sm:$0xff]  }
 0x1e4   :  { %v2213_v13 = vpop.f32.mrf.mxu1  ;;  %v5522_v10 = vld [vmem:[#allocation6 + $0x3b0] ss:$12 sps:$4 sm:$0xff]  }
 0x1e5   :  { %v2214_v25 = vadd.f32 %v2213_v13, %v539_v20  ;;  %v5526_v13 = vld [vmem:[#allocation6 + $0x398] ss:$12 sps:$4 sm:$0xff]  }
 0x1e6   :  { %3434 = vmatpush1.bf16.msra.mxu0 %v5523_v52  ;;  %v2215_v19 = vpop.f32.mrf.mxu1 }
 0x1e7   :  { %3435 = vmatprep.subr.bf16.mxu0 %v5529_v60  ;;  %v2216_v50 = vadd.f32 %v2215_v19, %v535_v53  ;;  %v5505_v60 = vld [vmem:[#allocation6 + $0x158] ss:$12 sps:$4 sm:$0xff]   ;;  %v5530_v19 = vld [vmem:[#allocation6 + $0x380] ss:$12 sps:$4 sm:$0xff]  }
 0x1e8   :  { %v2217_v23 = vpop.f32.mrf.mxu1 }
 0x1e9   :  { %v2218_v37 = vadd.f32 %v2217_v23, %v539_v20  ;;  %v542_v20 = vsub.s32 4, %v6075_v18  ;;  %v5534_v23 = vld [vmem:[#allocation6 + $0x368] ss:$12 sps:$4 sm:$0xff]   ;;  %v5639_v18 = vld [vmem:[#allocation12 + $0x78] sm:$0xff]  }
 0x1ea   :  { %3436 = vmatpush1.bf16.msra.mxu0 %v5527_v61  ;;  %v5506_v61 = vld [vmem:[#allocation6 + $0x98] ss:$12 sps:$4 sm:$0xff]  }
 0x1eb   :  { %3437 = vmatprep.subr.bf16.mxu0 %v5533_v62  ;;  %v5507_v62 = vld [vmem:[#allocation6 + $0x140] ss:$12 sps:$4 sm:$0xff]  }
 0x1ee   :  { %3438 = vmatpush1.bf16.msra.mxu0 %v5531_v63  ;;  %v5508_v63 = vld [vmem:[#allocation6 + $0x80] ss:$12 sps:$4 sm:$0xff]  }
 0x1ef   :  { %3439 = vmatprep.subr.bf16.mxu0 %v5537_v0  ;;  %v5509_v0 = vld [vmem:[#allocation6 + $0x128] ss:$12 sps:$4 sm:$0xff]  }
 0x1f2   :  { %3440 = vmatpush1.bf16.msra.mxu0 %v5535_v1  ;;  %v5510_v1 = vld [vmem:[#allocation6 + $0x68] ss:$12 sps:$4 sm:$0xff]  }
 0x1f3   :  { %3441 = vmatprep.subr.bf16.mxu0 %v5541_v2  ;;  %v5511_v2 = vld [vmem:[#allocation6 + $0x110] ss:$12 sps:$4 sm:$0xff]  }
 0x1f6   :  { %3442 = vmatpush1.bf16.msra.mxu0 %v5539_v3  ;;  %v5512_v3 = vld [vmem:[#allocation6 + $0x50] ss:$12 sps:$4 sm:$0xff]  }
 0x1f7   :  { %3443 = vmatprep.subr.bf16.mxu0 %v5545_v4  ;;  %v5513_v4 = vld [vmem:[#allocation6 + $0xf8] ss:$12 sps:$4 sm:$0xff]  }
 0x1fa   :  { %3444 = vmatpush1.bf16.msra.mxu0 %v5543_v5  ;;  %v5514_v5 = vld [vmem:[#allocation6 + $0x38] ss:$12 sps:$4 sm:$0xff]  }
 0x1fb   :  { %3445 = vmatprep.subr.bf16.mxu0 %v5549_v6  ;;  %v5515_v6 = vld [vmem:[#allocation6 + $0xe0] ss:$12 sps:$4 sm:$0xff]  }
 0x1fe   :  { %3446 = vmatpush1.bf16.msra.mxu0 %v5547_v7  ;;  %v5517_v7 = vld [vmem:[#allocation6 + $0xc8] ss:$12 sps:$4 sm:$0xff]  }
 0x1ff   :  { %4872 = vmatprep.subr.bf16.mxu0 %v5551_v8  ;;  %v5518_v8 = vld [vmem:[#allocation6 + $0x8] ss:$12 sps:$4 sm:$0xff]  }
 0x201   :  { %v2254_v11 = vpop.f32.mrf.mxu0 }
 0x202   :  { %v2255_v33 = vadd.f32 %v2254_v11, %v2212_v26 }
 0x203   :  { %v2256_v14 = vpop.f32.mrf.mxu0 }
 0x204   :  { %v2257_v55 = vadd.f32 %v2256_v14, %v2214_v25 }
 0x205   :  { %v2258_v28 = vpop.f32.mrf.mxu0 }
 0x206   :  { %v2259_v38 = vadd.f32 %v2258_v28, %v2216_v50 }
 0x207   :  { %v2260_v24 = vpop.f32.mrf.mxu0 }
 0x208   :  { %v2261_v32 = vadd.f32 %v2260_v24, %v2218_v37  ;;  %v543_v24 = vrot.slane %v6084_v36, %v542_v20  ;;  %v5542_v37 = vld [vmem:[#allocation6 + $0x338] ss:$12 sps:$4 sm:$0xff]  }
 0x209   :  { %v5576_v20 = vld [vmem:[#allocation9 + $0x40] ss:$8 sps:$4 sm:$0xff]  }
 0x221   :  { %v2340_v31 = vpop.f32.mrf.mxu0 }
 0x222   :  { %v2297_v27 = vpop.f32.mrf.mxu1 }
 0x223   :  { %v2342_v35 = vpop.f32.mrf.mxu0  ;;  %v2298_v41 = vadd.f32 %v2297_v27, %v2255_v33  ;;  %v5538_v27 = vld [vmem:[#allocation6 + $0x350] ss:$12 sps:$4 sm:$0xff]  }
 0x224   :  { %v2299_v34 = vpop.f32.mrf.mxu1 }
 0x225   :  { %v2300_v39 = vadd.f32 %v2299_v34, %v2257_v55  ;;  %v2344_v43 = vpop.f32.mrf.mxu0  ;;  %v2341_v51 = vadd.f32 %v2340_v31, %v2298_v41 }
 0x226   :  { %v2301_v42 = vpop.f32.mrf.mxu1 }
 0x227   :  { %v2302_v44 = vadd.f32 %v2301_v42, %v2259_v38  ;;  %v2343_v48 = vadd.f32 %v2342_v35, %v2300_v39  ;;  %v2346_v29 = vpop.f32.mrf.mxu0  ;;  %v2515_v46 = vmax.f32 %v2341_v51, 0.0 }
 0x228   :  { %v2303_v47 = vpop.f32.mrf.mxu1 }
 0x229   :  { %v2345_v40 = vadd.f32 %v2344_v43, %v2302_v44  ;;  %v2304_v49 = vadd.f32 %v2303_v47, %v2261_v32  ;;  %v2516_v54 = vmax.f32 %v2343_v48, 0.0  ;;  %v5546_v48 = vld [vmem:[#allocation6 + $0x320] ss:$12 sps:$4 sm:$0xff]  }
 0x22b   :  { %v2347_v12 = vadd.f32 %v2346_v29, %v2304_v49  ;;  %v2520_v15 = vmax.f32 %v2345_v40, 0.0 }
 0x22d   :  { %v2521_v56 = vmax.f32 %v2347_v12, 0.0  ;;  %v6119_v52 = vpack.c.bf16 %v2520_v15, %v2515_v46 }
 0x22f   :  { %v6117_v57 = vpack.c.bf16 %v2521_v56, %v2516_v54  ;;  %v5550_v54 = vld [vmem:[#allocation6 + $0x308] ss:$12 sps:$4 sm:$0xff]  }
 0x231   :  { %3420 = vmatprep.mubr.bf16.mxu1 %v6117_v57 }
 0x232   :  { %3421 = vmatmul.mubr.bf16.vlgmr.msra.gmra.mxu1 %v6119_v52 }
 0x233   :  { %4851 = vmatpush3.bf16.msra.mxu1 %v5504_v59  ;;  %3506 = vmatprep.mubr.bf16.mxu1 %v6099_v30  ;;  %v5516_v30 = vld [vmem:[#allocation6 + $0x20] ss:$12 sps:$4 sm:$0xff]  }
 0x234   :  { %4852 = vmatprep.subr.bf16.mxu1 %v5505_v60  ;;  %v5552_v60 = vld [vmem:[#allocation6 + $0x230] ss:$12 sps:$4 sm:$0xff]  }
 0x237   :  { %4853 = vmatpush3.bf16.msra.mxu1 %v5506_v61 }
 0x238   :  { %4854 = vmatprep.subr.bf16.mxu1 %v5507_v62  ;;  %v5553_v62 = vld [vmem:[#allocation6 + $0x2d8] ss:$12 sps:$4 sm:$0xff]  }
 0x23b   :  { %4855 = vmatpush3.bf16.msra.mxu1 %v5508_v63  ;;  %v5554_v63 = vld [vmem:[#allocation6 + $0x218] ss:$12 sps:$4 sm:$0xff]  }
 0x23c   :  { %4856 = vmatprep.subr.bf16.mxu1 %v5509_v0  ;;  %v5555_v0 = vld [vmem:[#allocation6 + $0x2c0] ss:$12 sps:$4 sm:$0xff]  }
 0x23f   :  { %4857 = vmatpush3.bf16.msra.mxu1 %v5510_v1  ;;  %v5556_v1 = vld [vmem:[#allocation6 + $0x200] ss:$12 sps:$4 sm:$0xff]  }
 0x240   :  { %4858 = vmatprep.subr.bf16.mxu1 %v5511_v2  ;;  %v5557_v2 = vld [vmem:[#allocation6 + $0x2a8] ss:$12 sps:$4 sm:$0xff]  }
 0x241   :  { %v4791_v11 = vpop.f32.mrf.mxu0 }
 0x242   :  { %v4813_v14 = vpop.f32.mrf.mxu1 }
 0x243   :  { %4859 = vmatpush3.bf16.msra.mxu1 %v5512_v3  ;;  %v4792_v16 = vpop.f32.mrf.mxu0  ;;  %v5558_v3 = vld [vmem:[#allocation6 + $0x1e8] ss:$12 sps:$4 sm:$0xff]  }
 0x244   :  { %4860 = vmatprep.subr.bf16.mxu1 %v5513_v4  ;;  %v4814_v28 = vpop.f32.mrf.mxu1  ;;  %v4793_v25 = vadd.f32 %v4792_v16, %v4791_v11  ;;  %v5559_v4 = vld [vmem:[#allocation6 + $0x290] ss:$12 sps:$4 sm:$0xff]   ;;  %v5575_v16 = vld [vmem:[#allocation9 + $0x54] ss:$8 sps:$4 sm:$0xff]  }
 0x245   :  { %v4794_v53 = vpop.f32.mrf.mxu0  ;;  %v4815_v55 = vadd.f32 %v4814_v28, %v4813_v14  ;;  %v5567_v11 = vld [vmem:[#allocation9 + $0x70] ss:$8 sps:$4 sm:$0xff]   ;;  %v5570_v14 = vld [vmem:[#allocation9 + $0x60] ss:$8 sps:$4 sm:$0xff]   ;;  %v5578_v28 = vld [vmem:[#allocation9 + $0x44] ss:$8 sps:$4 sm:$0xff]  }
 0x246   :  { %v2384_v50 = vadd.f32 %v4793_v25, %v543_v24  ;;  %v5585_v25 = vld [vmem:[#allocation9 + $0x10] ss:$8 sps:$4 sm:$0xff]  }
 0x247   :  { %4861 = vmatpush3.bf16.msra.mxu1 %v5514_v5  ;;  %v4795_v26 = vpop.f32.mrf.mxu0  ;;  %v5560_v5 = vld [vmem:[#allocation6 + $0x1d0] ss:$12 sps:$4 sm:$0xff]  }
 0x248   :  { %4862 = vmatprep.subr.bf16.mxu1 %v5515_v6  ;;  %v4796_v33 = vadd.f32 %v4795_v26, %v4794_v53  ;;  %v2425_v41 = vadd.f32 %v4815_v55, %v2384_v50  ;;  %v5561_v6 = vld [vmem:[#allocation6 + $0x278] ss:$12 sps:$4 sm:$0xff]   ;;  %v5590_v26 = vld [vmem:[#allocation9 + $0x4] ss:$8 sps:$4 sm:$0xff]   ;;  %v5591_v50 = vld [vmem:[#allocation9 + $0xf0] ss:$8 sps:$4 sm:$0xff]  }
 0x249   :  { %v5581_v53 = vld [vmem:[#allocation9 + $0x34] ss:$8 sps:$4 sm:$0xff]   ;;  %v5596_v55 = vld [vmem:[#allocation9 + $0xe4] ss:$8 sps:$4 sm:$0xff]  }
 0x24a   :  { %v2387_v36 = vadd.f32 %v4796_v33, %v543_v24  ;;  %v5582_v24 = vld [vmem:[#allocation9 + $0x20] ss:$8 sps:$4 sm:$0xff]  }
 0x24b   :  { %4863 = vmatpush3.bf16.msra.mxu1 %v5516_v30  ;;  %v5562_v30 = vld [vmem:[#allocation6 + $0x1b8] ss:$12 sps:$4 sm:$0xff]  }
 0x24c   :  { %4864 = vmatprep.subr.bf16.mxu1 %v5517_v7  ;;  %v5564_v7 = vld [vmem:[#allocation6 + $0x1a0] ss:$12 sps:$4 sm:$0xff]  }
 0x24d   :  { %v5594_v33 = vld [vmem:[#allocation9 + $0xe0] ss:$8 sps:$4 sm:$0xff]  }
 0x24f   :  { %4865 = vmatpush3.bf16.msra.mxu1 %v5518_v8  ;;  %v5566_v8 = vld [vmem:[#allocation6 + $0x188] ss:$12 sps:$4 sm:$0xff]  }
 0x250   :  { %4954 = vmatprep.subr.bf16.mxu1 %v5894_v45 }
 0x252   :  { %3507 = vmatmul.mubr.bf16.vlgmr.msra.gmra.mxu1 %v6107_v58  ;;  %v4816_v58 = vpop.f32.mrf.mxu1 }
 0x253   :  { %4955 = vmatpush3.bf16.msra.mxu1 %v5522_v10  ;;  %4970 = vmatprep.mubr.msk.bf16.mxu1 %vm5895_vm0, %v5894_v45  ;;  %v5569_v10 = vld [vmem:[#allocation9 + $0x74] ss:$8 sps:$4 sm:$0xff]  }
 0x254   :  { %4956 = vmatprep.subr.bf16.mxu1 %v5894_v45  ;;  %v4817_v31 = vpop.f32.mrf.mxu1 }
 0x255   :  { %v4818_v42 = vadd.f32 %v4817_v31, %v4816_v58  ;;  %v5584_v58 = vld [vmem:[#allocation9 + $0x24] ss:$8 sps:$4 sm:$0xff]   ;;  %v5593_v31 = vld [vmem:[#allocation9 + $0xf4] ss:$8 sps:$4 sm:$0xff]  }
 0x257   :  { %4957 = vmatpush3.bf16.msra.mxu1 %v5526_v13  ;;  %v2428_v51 = vadd.f32 %v4818_v42, %v2387_v36  ;;  %v5572_v13 = vld [vmem:[#allocation9 + $0x64] ss:$8 sps:$4 sm:$0xff]   ;;  %v5615_v42 = vld [vmem:[#allocation9 + $0x170] ss:$8 sps:$4 sm:$0xff]  }
 0x258   :  { %4958 = vmatprep.subr.bf16.mxu1 %v5894_v45  ;;  %v5608_v36 = vld [vmem:[#allocation9 + $0xa4] ss:$8 sps:$4 sm:$0xff]  }
 0x25b   :  { %4959 = vmatpush3.bf16.msra.mxu1 %v5530_v19  ;;  %v5573_v19 = vld [vmem:[#allocation9 + $0x50] ss:$8 sps:$4 sm:$0xff]  }
 0x25c   :  { %4960 = vmatprep.subr.bf16.mxu1 %v5894_v45 }
 0x25f   :  { %4961 = vmatpush3.bf16.msra.mxu1 %v5534_v23  ;;  %v5579_v23 = vld [vmem:[#allocation9 + $0x30] ss:$8 sps:$4 sm:$0xff]  }
 0x260   :  { %4962 = vmatprep.subr.bf16.mxu1 %v5894_v45 }
 0x261   :  { %v4835_v34 = vpop.f32.mrf.mxu0 }
 0x262   :  { %v2506_v35 = vpop.f32.mrf.mxu1 }
 0x263   :  { %4963 = vmatpush3.bf16.msra.mxu1 %v5538_v27  ;;  %v4836_v38 = vpop.f32.mrf.mxu0  ;;  %v5588_v27 = vld [vmem:[#allocation9] ss:$8 sps:$4 sm:$0xff]  }
 0x264   :  { %v4952_v39 = vpop.f32.mrf.mxu1  ;;  %4964 = vmatprep.subr.bf16.mxu1 %v5894_v45  ;;  %v4837_v43 = vadd.f32 %v4836_v38, %v4835_v34  ;;  %v5599_v34 = vld [vmem:[#allocation9 + $0xd4] ss:$8 sps:$4 sm:$0xff]   ;;  %v5600_v38 = vld [vmem:[#allocation9 + $0xc0] ss:$8 sps:$4 sm:$0xff]  }
 0x265   :  { %v4838_v32 = vpop.f32.mrf.mxu0  ;;  %v5605_v39 = vld [vmem:[#allocation9 + $0xb4] ss:$8 sps:$4 sm:$0xff]  }
 0x266   :  { %v2509_v44 = vpop.f32.mrf.mxu1  ;;  %v2466_v47 = vadd.f32 %v4837_v43, %v2425_v41  ;;  %v5603_v41 = vld [vmem:[#allocation9 + $0xb0] ss:$8 sps:$4 sm:$0xff]   ;;  %v5617_v43 = vld [vmem:[#allocation9 + $0x174] ss:$8 sps:$4 sm:$0xff]  }
 0x267   :  { %4965 = vmatpush3.bf16.msra.mxu1 %v5542_v37  ;;  %v4839_v40 = vpop.f32.mrf.mxu0  ;;  %v5602_v37 = vld [vmem:[#allocation9 + $0xc4] ss:$8 sps:$4 sm:$0xff]  }
 0x268   :  { %v4953_v49 = vpop.f32.mrf.mxu1  ;;  %4966 = vmatprep.subr.bf16.mxu1 %v5894_v45  ;;  %v4840_v29 = vadd.f32 %v4839_v40, %v4838_v32  ;;  %v2507_v12 = vadd.f32 %v2506_v35, %v2466_v47  ;;  %v5597_v35 = vld [vmem:[#allocation9 + $0xd0] ss:$8 sps:$4 sm:$0xff]   ;;  %v5620_v32 = vld [vmem:[#allocation9 + $0x164] ss:$8 sps:$4 sm:$0xff]   ;;  %v5618_v47 = vld [vmem:[#allocation9 + $0x160] ss:$8 sps:$4 sm:$0xff]  }
 0x269   :  { %v5623_v40 = vld [vmem:[#allocation9 + $0x154] ss:$8 sps:$4 sm:$0xff]   ;;  %v5609_v49 = vld [vmem:[#allocation9 + $0x90] ss:$8 sps:$4 sm:$0xff]  }
 0x26a   :  { %v2469_v15 = vadd.f32 %v4840_v29, %v2428_v51  ;;  %v2517_v46 = vmax.f32 %v2507_v12, 0.0  ;;  %v5621_v51 = vld [vmem:[#allocation9 + $0x150] ss:$8 sps:$4 sm:$0xff]   ;;  %v5614_v29 = vld [vmem:[#allocation9 + $0x84] ss:$8 sps:$4 sm:$0xff]  }
 0x26b   :  { %4967 = vmatpush3.bf16.msra.mxu1 %v5546_v48  ;;  %v5611_v48 = vld [vmem:[#allocation9 + $0x94] ss:$8 sps:$4 sm:$0xff]   ;;  %v5626_v12 = vld [vmem:[#allocation9 + $0x144] ss:$8 sps:$4 sm:$0xff]  }
 0x26c   :  { %4968 = vmatprep.subr.bf16.mxu1 %v5894_v45  ;;  %v2510_v56 = vadd.f32 %v2509_v44, %v2469_v15  ;;  %v5606_v44 = vld [vmem:[#allocation9 + $0xa0] ss:$8 sps:$4 sm:$0xff]  }
 0x26d   :  { %v5612_v15 = vld [vmem:[#allocation9 + $0x80] ss:$8 sps:$4 sm:$0xff]  }
 0x26e   :  { %v2522_v59 = vmax.f32 %v2510_v56, 0.0  ;;  %v5629_v56 = vld [vmem:[#allocation9 + $0x134] ss:$8 sps:$4 sm:$0xff]  }
 0x26f   :  { %4969 = vmatpush3.bf16.msra.mxu1 %v5550_v54  ;;  %v5624_v54 = vld [vmem:[#allocation9 + $0x140] ss:$8 sps:$4 sm:$0xff]  }
 0x270   :  { %v2527_v61 = vpack.c.bf16 %v2522_v59, %v2517_v46  ;;  %3949 = vmatprep.subr.bf16.mxu1 %v5617_v43  ;;  %v5627_v46 = vld [vmem:[#allocation9 + $0x130] ss:$8 sps:$4 sm:$0xff]   ;;  %v5632_v59 = vld [vmem:[#allocation9 + $0x124] ss:$8 sps:$4 sm:$0xff]  }
 0x272   :  { %3464 = vmatmul.mubr.bf16.vlgmr.msra.gmra.mxu0 %v2527_v61  ;;  %4971 = vmatmul.mubr.bf16.vlgmr.msra.gmra.mxu1 %v2527_v61  ;;  %v5635_v61 = vld [vmem:[#allocation9 + $0x114] ss:$8 sps:$4 sm:$0xff]  }
 0x273   :  { %4873 = vmatpush3.bf16.msra.mxu0 %v5552_v60  ;;  %3547 = vmatprep.mubr.bf16.mxu0 %v6117_v57  ;;  %v5563_v57 = vld [vmem:[#allocation6 + $0x260] ss:$12 sps:$4 sm:$0xff]  }
 0x274   :  { %4874 = vmatprep.subr.bf16.mxu0 %v5553_v62  ;;  %3981 = vmatprep.mubr.bf16.mxu1 %v5893_v22  ;;  %v5565_v22 = vld [vmem:[#allocation6 + $0x248] ss:$12 sps:$4 sm:$0xff]   ;;  %v5630_v60 = vld [vmem:[#allocation9 + $0x120] ss:$8 sps:$4 sm:$0xff]  }
 0x275   :  { %3950 = vmatpush1.bf16.msra.mxu1 %v5615_v42  ;;  %v5633_v62 = vld [vmem:[#allocation9 + $0x110] ss:$8 sps:$4 sm:$0xff]  }
 0x276   :  { %3951 = vmatprep.subr.bf16.mxu1 %v5620_v32 }
 0x277   :  { %4875 = vmatpush3.bf16.msra.mxu0 %v5554_v63  ;;  %v5638_v63 = vld [vmem:[#allocation9 + $0x104] ss:$8 sps:$4 sm:$0xff]  }
 0x278   :  { %4876 = vmatprep.subr.bf16.mxu0 %v5555_v0  ;;  %v5636_v0 = vld [vmem:[#allocation9 + $0x100] ss:$8 sps:$4 sm:$0xff]  }
 0x279   :  { %3952 = vmatpush1.bf16.msra.mxu1 %v5618_v47 }
 0x27a   :  { %3953 = vmatprep.subr.bf16.mxu1 %v5623_v40 }
 0x27b   :  { %4877 = vmatpush3.bf16.msra.mxu0 %v5556_v1 }
 0x27c   :  { %4878 = vmatprep.subr.bf16.mxu0 %v5557_v2 }
 0x27d   :  { %3954 = vmatpush1.bf16.msra.mxu1 %v5621_v51 }
 0x27e   :  { %3955 = vmatprep.subr.bf16.mxu1 %v5626_v12 }
 0x27f   :  { %4879 = vmatpush3.bf16.msra.mxu0 %v5558_v3 }
 0x280   :  { %4880 = vmatprep.subr.bf16.mxu0 %v5559_v4 }
 0x281   :  { %3956 = vmatpush1.bf16.msra.mxu1 %v5624_v54 }
 0x282   :  { %3957 = vmatprep.subr.bf16.mxu1 %v5629_v56 }
 0x283   :  { %4881 = vmatpush3.bf16.msra.mxu0 %v5560_v5 }
 0x284   :  { %4882 = vmatprep.subr.bf16.mxu0 %v5561_v6 }
 0x285   :  { %3958 = vmatpush1.bf16.msra.mxu1 %v5627_v46 }
 0x286   :  { %3959 = vmatprep.subr.bf16.mxu1 %v5632_v59 }
 0x287   :  { %4883 = vmatpush3.bf16.msra.mxu0 %v5562_v30 }
 0x288   :  { %4884 = vmatprep.subr.bf16.mxu0 %v5563_v57 }
 0x289   :  { %3960 = vmatpush1.bf16.msra.mxu1 %v5630_v60 }
 0x28a   :  { %3961 = vmatprep.subr.bf16.mxu1 %v5635_v61 }
 0x28b   :  { %4885 = vmatpush3.bf16.msra.mxu0 %v5564_v7 }
 0x28c   :  { %4886 = vmatprep.subr.bf16.mxu0 %v5565_v22 }
 0x28d   :  { %3962 = vmatpush1.bf16.msra.mxu1 %v5633_v62 }
 0x28e   :  { %3963 = vmatprep.subr.bf16.mxu1 %v5638_v63 }
 0x28f   :  { %4887 = vmatpush3.bf16.msra.mxu0 %v5566_v8  ;;  %v2688_v8 = vld [vmem:[#allocation7] sm:$0x7] }
 0x290   :  { %3906 = vmatprep.subr.bf16.mxu0 %v5569_v10  ;;  %v2697_v10 = vrot.slane %v2688_v8, %v6078_v21 }
 0x291   :  { %3964 = vmatpush1.bf16.msra.mxu1 %v5636_v0 }
 0x292   :  { %3548 = vmatmul.mubr.bf16.vlgmr.msra.gmra.mxu0 %v6119_v52  ;;  %v5587_v52 = vld [vmem:[#allocation9 + $0x14] ss:$8 sps:$4 sm:$0xff]   ;;  %4903 = vmatprep.subr.bf16.mxu1 %v5639_v18 }
 0x293   :  { %3907 = vmatpush1.bf16.msra.mxu0 %v5567_v11  ;;  %v2693_v11 = vrot.slane %v2688_v8, %v6095_v9 }
 0x294   :  { %3908 = vmatprep.subr.bf16.mxu0 %v5572_v13 }
 0x297   :  { %3909 = vmatpush1.bf16.msra.mxu0 %v5570_v14 }
 0x298   :  { %3910 = vmatprep.subr.bf16.mxu0 %v5575_v16 }
 0x29b   :  { %3911 = vmatpush1.bf16.msra.mxu0 %v5573_v19 }
 0x29c   :  { %3912 = vmatprep.subr.bf16.mxu0 %v5578_v28 }
 0x29f   :  { %3913 = vmatpush1.bf16.msra.mxu0 %v5576_v20 }
 0x2a0   :  { %3914 = vmatprep.subr.bf16.mxu0 %v5581_v53 }
 0x2a1   :  { %v3379_v5 = vpop.f32.mrf.mxu0 }
 0x2a2   :  { %v3380_v53 = vadd.f32 %v3379_v5, %v2693_v11  ;;  %v5645_v5 = vld [vmem:[#allocation12 + $0x60] sm:$0xff]  }
 0x2a3   :  { %3915 = vmatpush1.bf16.msra.mxu0 %v5579_v23  ;;  %v3381_v30 = vpop.f32.mrf.mxu0 }
 0x2a4   :  { %3916 = vmatprep.subr.bf16.mxu0 %v5584_v58  ;;  %v3382_v28 = vadd.f32 %v3381_v30, %v2697_v10  ;;  %v5647_v30 = vld [vmem:[#allocation12 + $0x58] sm:$0xff]  }
 0x2a5   :  { %v3383_v7 = vpop.f32.mrf.mxu0 }
 0x2a6   :  { %v3384_v20 = vadd.f32 %v3383_v7, %v2693_v11  ;;  %v5649_v7 = vld [vmem:[#allocation12 + $0x50] sm:$0xff]   ;;  %v5653_v11 = vld [vmem:[#allocation12 + $0x40] sm:$0xff]  }
 0x2a7   :  { %3917 = vmatpush1.bf16.msra.mxu0 %v5582_v24  ;;  %v3385_v13 = vpop.f32.mrf.mxu0 }
 0x2a8   :  { %3918 = vmatprep.subr.bf16.mxu0 %v5587_v52  ;;  %v3386_v24 = vadd.f32 %v3385_v13, %v2697_v10  ;;  %v5652_v10 = vld [vmem:[#allocation12 + $0x8] sm:$0xff]   ;;  %v5654_v13 = vld [vmem:[#allocation12] sm:$0xff]  }
 0x2ab   :  { %3919 = vmatpush1.bf16.msra.mxu0 %v5585_v25 }
 0x2ac   :  { %3920 = vmatprep.subr.bf16.mxu0 %v5590_v26 }
 0x2af   :  { %3921 = vmatpush1.bf16.msra.mxu0 %v5588_v27 }
 0x2b0   :  { %3922 = vmatprep.subr.bf16.mxu0 %v5593_v31 }
 0x2b3   :  { %3923 = vmatpush2.bf16.msra.mxu0 %v5591_v50 }
 0x2b4   :  { %3924 = vmatprep.subr.bf16.mxu0 %v5596_v55 }
 0x2b7   :  { %3925 = vmatpush2.bf16.msra.mxu0 %v5594_v33 }
 0x2b8   :  { %3926 = vmatprep.subr.bf16.mxu0 %v5599_v34 }
 0x2bb   :  { %3927 = vmatpush2.bf16.msra.mxu0 %v5597_v35 }
 0x2bc   :  { %3928 = vmatprep.subr.bf16.mxu0 %v5602_v37 }
 0x2bf   :  { %3929 = vmatpush2.bf16.msra.mxu0 %v5600_v38 }
 0x2c0   :  { %3930 = vmatprep.subr.bf16.mxu0 %v5605_v39 }
 0x2c3   :  { %3931 = vmatpush2.bf16.msra.mxu0 %v5603_v41 }
 0x2c4   :  { %3932 = vmatprep.subr.bf16.mxu0 %v5608_v36 }
 0x2c7   :  { %3933 = vmatpush2.bf16.msra.mxu0 %v5606_v44  ;;  %v2701_v44 = vrot.slane %v2688_v8, %v534_v17  ;;  %v5640_v17 = vld [vmem:[#allocation12 + $0x38] sm:$0xff]   ;;  %v5651_v8 = vld [vmem:[#allocation12 + $0x48] sm:$0xff]  }
 0x2c8   :  { %3934 = vmatprep.subr.bf16.mxu0 %v5611_v48 }
 0x2cb   :  { %3935 = vmatpush2.bf16.msra.mxu0 %v5609_v49 }
 0x2cc   :  { %3936 = vmatprep.subr.bf16.mxu0 %v5614_v29 }
 0x2cf   :  { %3937 = vmatpush2.bf16.msra.mxu0 %v5612_v15 }
 0x2d0   :  { %4974 = vmatprep.subr.bf16.mxu0 %v5894_v45 }
 0x2f2   :  { %v3422_v1 = vpop.f32.mrf.mxu1 }
 0x2f3   :  { %v3423_v26 = vadd.f32 %v3422_v1, %v3380_v53  ;;  %v5641_v1 = vld [vmem:[#allocation12 + $0x70] sm:$0xff]  }
 0x2f4   :  { %v3424_v2 = vpop.f32.mrf.mxu1 }
 0x2f5   :  { %v3425_v52 = vadd.f32 %v3424_v2, %v3382_v28  ;;  %v5642_v2 = vld [vmem:[#allocation12 + $0x30] sm:$0xff]   ;;  %v5658_v28 = vld [vmem:[#allocation15 + $0x20] sm:$0xff]  }
 0x2f6   :  { %v3426_v3 = vpop.f32.mrf.mxu1 }
 0x2f7   :  { %v3427_v25 = vadd.f32 %v3426_v3, %v3384_v20  ;;  %v5643_v3 = vld [vmem:[#allocation12 + $0x68] sm:$0xff]  }
 0x2f8   :  { %v3428_v4 = vpop.f32.mrf.mxu1 }
 0x2f9   :  { %v3429_v50 = vadd.f32 %v3428_v4, %v3386_v24  ;;  %v5644_v4 = vld [vmem:[#allocation12 + $0x28] sm:$0xff]  }
 0x312   :  { %v4866_v6 = vpop.f32.mrf.mxu1 }
 0x314   :  { %v4867_v57 = vpop.f32.mrf.mxu1 }
 0x315   :  { %v4868_v47 = vadd.f32 %v4867_v57, %v4866_v6  ;;  %v5646_v6 = vld [vmem:[#allocation12 + $0x20] sm:$0xff]   ;;  %v5648_v57 = vld [vmem:[#allocation12 + $0x18] sm:$0xff]  }
 0x316   :  { %v4869_v22 = vpop.f32.mrf.mxu1 }
 0x317   :  { %v3509_v49 = vadd.f32 %v4868_v47, %v2701_v44  ;;  %v5660_v47 = vld [vmem:[#allocation15 + $0x10] sm:$0xff]  }
 0x318   :  { %v4870_v14 = vpop.f32.mrf.mxu1 }
 0x319   :  { %v4871_v51 = vadd.f32 %v4870_v14, %v4869_v22  ;;  %v5650_v22 = vld [vmem:[#allocation12 + $0x10] sm:$0xff]   ;;  %v5655_v14 = vld [vmem:[#allocation15 + $0x38] sm:$0xff]  }
 0x31b   :  { %v3512_v56 = vadd.f32 %v4871_v51, %v2701_v44 }
 0x332   :  { %v3465_v16 = vpop.f32.mrf.mxu0  ;;  %v3590_v19 = vpop.f32.mrf.mxu1 }
 0x333   :  { %v3466_v34 = vadd.f32 %v3465_v16, %v3423_v26  ;;  %v5656_v16 = vld [vmem:[#allocation15 + $0x30] sm:$0xff]  }
 0x334   :  { %v3467_v23 = vpop.f32.mrf.mxu0  ;;  %v4972_v58 = vpop.f32.mrf.mxu1 }
 0x335   :  { %v3468_v55 = vadd.f32 %v3467_v23, %v3425_v52  ;;  %v3597_v42 = vmax.f32 %v3466_v34, 0.0  ;;  %v3654_v23 = vld [vmem:[#allocation10] sm:$0x3] }
 0x336   :  { %v3469_v27 = vpop.f32.mrf.mxu0  ;;  %v3593_v31 = vpop.f32.mrf.mxu1  ;;  %v3663_v24 = vrot.slane %v3654_v23, %v6078_v21  ;;  %v3659_v52 = vrot.slane %v3654_v23, %v6095_v9  ;;  %v5659_v9 = vld [vmem:[#allocation15 + $0x18] sm:$0xff]  }
 0x337   :  { %v3470_v33 = vadd.f32 %v3469_v27, %v3427_v25  ;;  %v3598_v41 = vmax.f32 %v3468_v55, 0.0 }
 0x338   :  { %v3471_v35 = vpop.f32.mrf.mxu0  ;;  %v4973_v37 = vpop.f32.mrf.mxu1 }
 0x339   :  { %v3472_v38 = vadd.f32 %v3471_v35, %v3429_v50  ;;  %v3600_v39 = vmax.f32 %v3470_v33, 0.0 }
 0x33b   :  { %v3601_v36 = vmax.f32 %v3472_v38, 0.0  ;;  %v3603_v32 = vpack.c.bf16 %v3600_v39, %v3597_v42 }
 0x33d   :  { %v3604_v43 = vpack.c.bf16 %v3601_v36, %v3598_v41 }
 0x33f   :  { %3938 = vmatprep.mubr.bf16.mxu0 %v3604_v43 }
 0x340   :  { %3939 = vmatmul.mubr.bf16.vlgmr.msra.gmra.mxu0 %v3603_v32 }
 0x341   :  { %4990 = vmatprep.mubr.msk.bf16.mxu0 %vm5895_vm0, %v5894_v45  ;;  %4975 = vmatpush3.bf16.msra.mxu0 %v5655_v14 }
 0x342   :  { %4976 = vmatprep.subr.bf16.mxu0 %v5894_v45 }
 0x345   :  { %4977 = vmatpush3.bf16.msra.mxu0 %v5656_v16 }
 0x346   :  { %4978 = vmatprep.subr.bf16.mxu0 %v5894_v45 }
 0x352   :  { %v4888_v48 = vpop.f32.mrf.mxu0 }
 0x354   :  { %v4889_v40 = vpop.f32.mrf.mxu0 }
 0x355   :  { %v4890_v29 = vadd.f32 %v4889_v40, %v4888_v48  ;;  %v5661_v48 = vld [vmem:[#allocation15 + $0x8] sm:$0xff]   ;;  %v5662_v40 = vld [vmem:[#allocation15] sm:$0xff]  }
 0x356   :  { %v4891_v12 = vpop.f32.mrf.mxu0 }
 0x357   :  { %v3550_v15 = vadd.f32 %v4890_v29, %v3509_v49 }
 0x358   :  { %v4892_v54 = vpop.f32.mrf.mxu0 }
 0x359   :  { %v4893_v46 = vadd.f32 %v4892_v54, %v4891_v12  ;;  %v3591_v59 = vadd.f32 %v3590_v19, %v3550_v15  ;;  %v5657_v19 = vld [vmem:[#allocation15 + $0x28] sm:$0xff]   ;;  %v4749_v12 = vld [vmem:[#allocation13] ss:$0 sm:$0xff] }
 0x35a   :  { %4979 = vmatpush3.bf16.msra.mxu0 %v5657_v19 }
 0x35b   :  { %v3553_v60 = vadd.f32 %v4893_v46, %v3512_v56  ;;  %v3599_v62 = vmax.f32 %v3591_v59, 0.0  ;;  %4980 = vmatprep.subr.bf16.mxu0 %v5894_v45 }
 0x35d   :  { %v3594_v61 = vadd.f32 %v3593_v31, %v3553_v60 }
 0x35e   :  { %4981 = vmatpush3.bf16.msra.mxu0 %v5658_v28 }
 0x35f   :  { %v3602_v63 = vmax.f32 %v3594_v61, 0.0  ;;  %4982 = vmatprep.subr.bf16.mxu0 %v5894_v45 }
 0x361   :  { %v3605_v0 = vpack.c.bf16 %v3602_v63, %v3599_v62  ;;  %v4766_v63 = vld [vmem:[#allocation16] ss:$0 sm:$0xff] }
 0x362   :  { %4983 = vmatpush3.bf16.msra.mxu0 %v5659_v9 }
 0x363   :  { %3982 = vmatmul.mubr.bf16.vlgmr.msra.gmra.mxu1 %v3605_v0  ;;  %4984 = vmatprep.subr.bf16.mxu0 %v5894_v45 }
 0x364   :  { %4904 = vmatpush3.bf16.msra.mxu1 %v5640_v17 }
 0x365   :  { %4905 = vmatprep.subr.bf16.mxu1 %v5641_v1 }
 0x366   :  { %4985 = vmatpush3.bf16.msra.mxu0 %v5660_v47 }
 0x367   :  { %4986 = vmatprep.subr.bf16.mxu0 %v5894_v45 }
 0x368   :  { %4906 = vmatpush3.bf16.msra.mxu1 %v5642_v2 }
 0x369   :  { %4907 = vmatprep.subr.bf16.mxu1 %v5643_v3 }
 0x36a   :  { %4987 = vmatpush3.bf16.msra.mxu0 %v5661_v48 }
 0x36b   :  { %4988 = vmatprep.subr.bf16.mxu0 %v5894_v45 }
 0x36c   :  { %4908 = vmatpush3.bf16.msra.mxu1 %v5644_v4 }
 0x36d   :  { %4909 = vmatprep.subr.bf16.mxu1 %v5645_v5 }
 0x36e   :  { %4989 = vmatpush3.bf16.msra.mxu0 %v5662_v40 }
 0x370   :  { %4910 = vmatpush3.bf16.msra.mxu1 %v5646_v6 }
 0x371   :  { %4911 = vmatprep.subr.bf16.mxu1 %v5647_v30 }
 0x374   :  { %4912 = vmatpush3.bf16.msra.mxu1 %v5648_v57 }
 0x375   :  { %4913 = vmatprep.subr.bf16.mxu1 %v5649_v7 }
 0x378   :  { %4914 = vmatpush3.bf16.msra.mxu1 %v5650_v22 }
 0x379   :  { %4915 = vmatprep.subr.bf16.mxu1 %v5651_v8 }
 0x37c   :  { %4916 = vmatpush3.bf16.msra.mxu1 %v5652_v10 }
 0x37d   :  { %4917 = vmatprep.subr.bf16.mxu1 %v5653_v11 }
 0x380   :  { %4918 = vmatpush3.bf16.msra.mxu1 %v5654_v13 }
 0x400   :  { %v3940_v20 = vpop.f32.mrf.mxu0 }
 0x401   :  { %v3941_v55 = vadd.f32 %v3940_v20, %v3659_v52 }
 0x402   :  { %v3942_v53 = vpop.f32.mrf.mxu0 }
 0x403   :  { %v3943_v31 = vadd.f32 %v3942_v53, %v3663_v24 }
 0x404   :  { %v3944_v58 = vpop.f32.mrf.mxu0 }
 0x405   :  { %v3945_v50 = vadd.f32 %v3944_v58, %v3659_v52 }
 0x406   :  { %v3946_v26 = vpop.f32.mrf.mxu0 }
 0x407   :  { %v3947_v34 = vadd.f32 %v3946_v26, %v3663_v24 }
 0x423   :  { %v3983_v25 = vpop.f32.mrf.mxu1 }
 0x424   :  { %v3984_v38 = vadd.f32 %v3983_v25, %v3941_v55 }
 0x425   :  { %v3985_v27 = vpop.f32.mrf.mxu1 }
 0x426   :  { %v3986_v35 = vadd.f32 %v3985_v27, %v3943_v31  ;;  %v3992_v32 = vmax.f32 %v3984_v38, 0.0 }
 0x427   :  { %v3987_v33 = vpop.f32.mrf.mxu1 }
 0x428   :  { %v3988_v37 = vadd.f32 %v3987_v33, %v3945_v50  ;;  %v3993_v42 = vmax.f32 %v3986_v35, 0.0 }
 0x429   :  { %v3989_v39 = vpop.f32.mrf.mxu1 }
 0x42a   :  { %v3990_v41 = vadd.f32 %v3989_v39, %v3947_v34  ;;  %v3994_v36 = vmax.f32 %v3988_v37, 0.0 }
 0x42c   :  { %v3995_v43 = vmax.f32 %v3990_v41, 0.0  ;;  %v3996_v44 = vpack.c.bf16 %v3994_v36, %v3992_v32 }
 0x42e   :  { %v3997_v21 = vpack.c.bf16 %v3995_v43, %v3993_v42 }
 0x430   :  { %4165 = vmatprep.mubr.bf16.mxu1 %v3997_v21 }
 0x431   :  { %4166 = vmatmul.mubr.bf16.vlgmr.msra.gmra.mxu1 %v3996_v44 }
 0x4f1   :  { %v4919_v49 = vpop.f32.mrf.mxu1 }
 0x4f3   :  { %v4920_v51 = vpop.f32.mrf.mxu1 }
 0x4f4   :  { %v4921_v29 = vadd.f32 %v4920_v51, %v4919_v49 }
 0x4f5   :  { %v4922_v15 = vpop.f32.mrf.mxu1 }
 0x4f6   :  { %v4168_v56 = vadd.f32 %v4921_v29, %v4749_v12 }
 0x4f7   :  { %v4923_v54 = vpop.f32.mrf.mxu1 }
 0x4f8   :  { %v4924_v46 = vadd.f32 %v4923_v54, %v4922_v15  ;;  %v4174_v60 = vmax.f32 %v4168_v56, 0.0 }
 0x4fa   :  { %v4171_v59 = vadd.f32 %v4924_v46, %v4749_v12 }
 0x4fc   :  { %v4175_v61 = vmax.f32 %v4171_v59, 0.0 }
 0x4fe   :  { %v4176_v62 = vpack.c.bf16 %v4175_v61, %v4174_v60 }
 0x500   :  { %4991 = vmatmul.mubr.bf16.vlgmr.msra.gmra.mxu0 %v4176_v62 }
 0x5c0   :  { %v4282_v0 = vpop.f32.mrf.mxu0 }
 0x5c1   :  { %v4283_v18 = vadd.f32 %v4766_v63, %v4282_v0 }
 0x5c2   :  { %v4992_v17 = vpop.f32.mrf.mxu0 }
 0x5c3   :  { %4289 = vst [vmem:[%s6173_s11] sm:$0xff] %v4283_v18 }
 0x5c4   :  { %v4285_v45 = vpop.f32.mrf.mxu0 }
 0x5c5   :  { %v4286_v1 = vadd.f32 %v4766_v63, %v4285_v45 }
 0x5c6   :  { %v4993_v2 = vpop.f32.mrf.mxu0 }
 0x5c7   :  { %4290 = vst [vmem:[%s6173_s11 + $0x8] sm:$0xff] %v4286_v1 }
 0x5c8   :  { %4295 = vsyncpa [#allocation3], 1 }
 0x5c9   :  { %4296 = vsyncpa [#allocation5], 1 }
 0x5ca   :  { %4297 = vsyncpa [#allocation8], 1 }
 0x5cb   :  { %4298 = vsyncpa [#allocation11], 1 }
 0x5cc   :  { %4299 = vsyncpa [#allocation14], 1 }
 0x5cd   :  { %4300 = vsyncpa [#allocation17], 1 }

</bundles_post_ra>
